<compile_context>
chip_gen: v6e
topology: v6e:2x2x1
jax: 0.10.0
libtpu: 0.0.40
codegen_flags: <defaults>
</compile_context>

<pallas_src>
import functools

import jax
import jax.numpy as jnp
from jax import lax
from jax.experimental import pallas as pl
from jax.experimental.pallas import tpu as pltpu


# MXU operand dtype (f32 accumulation is always kept).  Set to jnp.float32 for
# bit-exact parity with an all-f32 reference (bf16 diverges at ~1e-2 rel).
_MXU_DTYPE = jnp.bfloat16
_LANE = 128          # lane width / MXU column multiple
_PAIR_TILE = 128     # decoder pair-axis tile (raise to 512-2048 at real npairs)


def _round_up(x, m):
    return (x + m - 1) // m * m


def _pad_to(x, shape):
    """Zero-pad x up to `shape` (trailing pad on every axis)."""
    return jnp.pad(x, [(0, t - s) for s, t in zip(x.shape, shape)])


def _mxu(a, b):
    """(M,K)@(K,N) on the MXU: bf16 operands, f32 accumulation."""
    return jnp.dot(a.astype(_MXU_DTYPE), b.astype(_MXU_DTYPE),
                   preferred_element_type=jnp.float32)


def _dot_t(a, b):
    """A @ Bᵀ as a lane-axis contraction (no transpose materialized)."""
    return lax.dot_general(a.astype(_MXU_DTYPE), b.astype(_MXU_DTYPE),
                           dimension_numbers=(((1,), (1,)), ((), ())),
                           preferred_element_type=jnp.float32)


def _sigmoid(x):
    # Exact sigmoid in f32 (exp on the EUP, exact divide) so the reconstruction
    # objective and the predicted probabilities match the PyTorch reference.
    return 1.0 / (1.0 + jnp.exp(-x))


# ----------------------------------------------------------------------------
# Kernel 1: bio encoder + graph encoder + block-diagonal reconstruction loss
# ----------------------------------------------------------------------------
def _encoder_loss_kernel(
    drug_x_ref, drug_adj_ref, pool_ref, inv_cnt_ref, gexpr_ref,
    adj_d_ref, adj_c_ref, drug_sim_ref, cline_sim_ref,
    gcn_w1_ref, gcn_w2_ref, fc_w_ref, fc_b_ref,
    cl_w1_ref, cl_b1_ref, cl_w2_ref, cl_b2_ref,
    hg_w1_ref, hg_w2_ref,
    h_ref, loss_ref, *, n_drug, n_cline,
):
    # ----- drug branch: 2-layer dense GCN over the atom graph -----
    a_adj = drug_adj_ref[...]
    x = _mxu(drug_x_ref[...], gcn_w1_ref[...])            # X @ W1
    x = jnp.maximum(_mxu(a_adj, x), 0.0)                   # relu(A @ XW1)
    x = _mxu(x, gcn_w2_ref[...])
    x = jnp.maximum(_mxu(a_adj, x), 0.0)

    # segment-mean pooling: one-hot sum on the MXU, 1/count on the small result
    pooled = _mxu(pool_ref[...], x) * inv_cnt_ref[...]     # (n_drug, H)
    drug_e = jnp.maximum(_mxu(pooled, fc_w_ref[...]) + fc_b_ref[...], 0.0)

    # ----- cell-line branch: 2-layer MLP on gene expression -----
    c = jnp.tanh(_mxu(gexpr_ref[...], cl_w1_ref[...]) + cl_b1_ref[...])
    cline_e = jnp.maximum(_mxu(c, cl_w2_ref[...]) + cl_b2_ref[...], 0.0)

    # ----- graph encoder (HGNN-style, 2 layers of tanh(adj @ X @ W)) -----
    # Both layers use adj only through its two column blocks so the (N,N)
    # adjacency is DMA'd exactly once and the drug/cell-line concatenation of
    # the embeddings is never materialized.
    w1 = hg_w1_ref[...]
    g = jnp.tanh(_mxu(adj_d_ref[...], _mxu(drug_e, w1))
                 + _mxu(adj_c_ref[...], _mxu(cline_e, w1)))
    t = _mxu(g, hg_w2_ref[...])
    g = jnp.tanh(_mxu(adj_d_ref[...], t[:n_drug])
                 + _mxu(adj_c_ref[...], t[n_drug:]))
    h_ref[...] = g

    # ----- fused block-diagonal reconstruction + per-block MSE (scalar out) --
    g_d = g[:n_drug]
    g_c = g[n_drug:]
    dd = _sigmoid(_dot_t(g_d, g_d)) - drug_sim_ref[...]     # (n_drug, n_drug)
    dc = _sigmoid(_dot_t(g_c, g_c)) - cline_sim_ref[...]    # (n_cline, n_cline)
    loss_ref[0, 0] = (jnp.sum(dd * dd) / float(n_drug * n_drug)
                      + jnp.sum(dc * dc) / float(n_cline * n_cline))


# ----------------------------------------------------------------------------
# Kernel 2: pair-scorer decoder (pair-tiled grid, in-kernel one-hot gather)
# ----------------------------------------------------------------------------
def _decoder_kernel(ida_ref, idb_ref, idc_ref, h_ref,
                    w1a_ref, w1b_ref, w1c_ref, b1_ref, w2_ref, b2_ref,
                    out_ref):
    n_nodes = h_ref.shape[0]
    tile_p = ida_ref.shape[0]
    node_iota = lax.broadcasted_iota(jnp.int32, (tile_p, n_nodes), 1)
    h = h_ref[...]                                          # (N, E) bf16, resident

    def gather(id_ref):
        # one-hot row gather on the MXU: (TILE,N) @ (N,E) — no HBM (P,E) copies
        onehot = (id_ref[...] == node_iota).astype(jnp.float32)
        return _mxu(onehot, h)                              # (TILE, E) f32

    d1 = (_mxu(gather(ida_ref), w1a_ref[...])               # split dec_w1 blocks:
          + _mxu(gather(idb_ref), w1b_ref[...])             # no (P, 3E) concat
          + _mxu(gather(idc_ref), w1c_ref[...])
          + b1_ref[...])
    d1 = jnp.maximum(d1, 0.0)                               # (TILE, H) f32

    # Layer 2 as a lane contraction → lane-dense (1, TILE) logits/stores.
    # (Alternative: jnp.sum(d1 * w2, -1) on the VPU, but that yields a
    #  sublane-major (TILE,1) result and masked partial stores.)
    logits = lax.dot_general(w2_ref[...].astype(_MXU_DTYPE),
                             d1.astype(_MXU_DTYPE),
                             dimension_numbers=(((1,), (1,)), ((), ())),
                             preferred_element_type=jnp.float32)
    out_ref[...] = _sigmoid(logits + b2_ref[0, 0])          # (1, TILE)


# ----------------------------------------------------------------------------
# Parameters (deterministic synthetic init — shapes follow the module design)
# ----------------------------------------------------------------------------
def init_params(key, drug_fdim, gexpr_dim, hidden, embed):
    ks = jax.random.split(key, 12)

    def w(k, shape, scale=0.1):
        return jax.random.normal(k, shape, jnp.float32) * scale

    return {
        # bio_encoder — drug branch (GCN)
        "gcn_w1": w(ks[0], (drug_fdim, hidden)),
        "gcn_w2": w(ks[1], (hidden, hidden)),
        "drug_fc_w": w(ks[2], (hidden, embed)),
        "drug_fc_b": w(ks[3], (embed,)),
        # bio_encoder — cell-line branch (MLP)
        "cline_w1": w(ks[4], (gexpr_dim, hidden)),
        "cline_b1": w(ks[5], (hidden,)),
        "cline_w2": w(ks[6], (hidden, embed)),
        "cline_b2": w(ks[7], (embed,)),
        # graph_encoder (HGNN-style)
        "hgnn_w1": w(ks[8], (embed, embed)),
        "hgnn_w2": w(ks[9], (embed, embed)),
        # decoder (pair scorer MLP)
        "dec_w1": w(ks[10], (3 * embed, hidden)),
        "dec_b1": jnp.zeros((hidden,), jnp.float32),
        "dec_w2": w(ks[11], (hidden, 1)),
        "dec_b2": jnp.zeros((1,), jnp.float32),
    }


# ----------------------------------------------------------------------------
# Forward pass (mirrors HypergraphSynergy.forward)
# ----------------------------------------------------------------------------
def hypergraph_synergy_forward(params, drug_feature, drug_adj, ibatch,
                               gexpr_data, adj, drug_sim_mat, cline_sim_mat,
                               druga_id, drugb_id, cellline_id, *, n_drug):
    n_cline = gexpr_data.shape[0]
    n_nodes = n_drug + n_cline
    embed = params["hgnn_w1"].shape[0]
    hidden = params["gcn_w2"].shape[0]
    e_pad = _round_up(embed, _LANE)
    h_pad = _round_up(hidden, _LANE)
    f32, bf16 = jnp.float32, _MXU_DTYPE

    # ---- one-time plain-JAX prep: pooling one-hot, adjacency column split,
    #      lane-padding (embed/hidden → 128) and bf16 pre-cast of MXU operands.
    onehot = (jnp.arange(n_drug)[:, None] == ibatch[None, :]).astype(f32)
    inv_counts = 1.0 / jnp.maximum(jnp.sum(onehot, axis=1, keepdims=True), 1.0)
    adj = adj.astype(f32)
    adj_d = adj[:, :n_drug]                       # (N, n_drug)   adjacency passed
    adj_c = adj[:, n_drug:]                       # (N, n_cline)  ONCE, split cols

    gcn_w1 = _pad_to(params["gcn_w1"], (params["gcn_w1"].shape[0], h_pad))
    gcn_w2 = _pad_to(params["gcn_w2"], (h_pad, h_pad))
    fc_w = _pad_to(params["drug_fc_w"], (h_pad, e_pad))
    fc_b = _pad_to(params["drug_fc_b"].reshape(1, -1), (1, e_pad))
    cl_w1 = _pad_to(params["cline_w1"], (params["cline_w1"].shape[0], h_pad))
    cl_b1 = _pad_to(params["cline_b1"].reshape(1, -1), (1, h_pad))
    cl_w2 = _pad_to(params["cline_w2"], (h_pad, e_pad))
    cl_b2 = _pad_to(params["cline_b2"].reshape(1, -1), (1, e_pad))
    hg_w1 = _pad_to(params["hgnn_w1"], (e_pad, e_pad))
    hg_w2 = _pad_to(params["hgnn_w2"], (e_pad, e_pad))

    enc_inputs = (
        drug_feature.astype(bf16), drug_adj.astype(bf16),
        onehot.astype(bf16), inv_counts.astype(f32),
        gexpr_data.astype(bf16), adj_d.astype(bf16), adj_c.astype(bf16),
        drug_sim_mat.astype(f32), cline_sim_mat.astype(f32),
        gcn_w1.astype(bf16), gcn_w2.astype(bf16),
        fc_w.astype(bf16), fc_b.astype(f32),
        cl_w1.astype(bf16), cl_b1.astype(f32),
        cl_w2.astype(bf16), cl_b2.astype(f32),
        hg_w1.astype(bf16), hg_w2.astype(bf16),
    )
    enc_kernel = functools.partial(_encoder_loss_kernel,
                                   n_drug=n_drug, n_cline=n_cline)
    graph_embed_pad, loss11 = pl.pallas_call(
        enc_kernel,
        out_shape=(jax.ShapeDtypeStruct((n_nodes, e_pad), jnp.float32),
                   jax.ShapeDtypeStruct((1, 1), jnp.float32)),
        in_specs=[pl.BlockSpec(memory_space=pltpu.MemorySpace.VMEM)]
                 * len(enc_inputs),
        out_specs=(pl.BlockSpec(memory_space=pltpu.MemorySpace.VMEM),
                   pl.BlockSpec(memory_space=pltpu.MemorySpace.SMEM)),
    )(*enc_inputs)
    emb_loss = loss11[0, 0]

    # ---- decoder: pair-tiled grid + in-kernel one-hot gather -----------------
    npairs = druga_id.shape[0]
    p_pad = _round_up(max(npairs, 1), _PAIR_TILE)

    def _pad_ids(ids):
        ids = ids.astype(jnp.int32)
        return jnp.pad(ids, (0, p_pad - npairs)).reshape(p_pad, 1)

    ida, idb, idc = _pad_ids(druga_id), _pad_ids(drugb_id), _pad_ids(cellline_id)

    w1a = _pad_to(params["dec_w1"][:embed], (e_pad, h_pad)).astype(bf16)
    w1b = _pad_to(params["dec_w1"][embed:2 * embed], (e_pad, h_pad)).astype(bf16)
    w1c = _pad_to(params["dec_w1"][2 * embed:], (e_pad, h_pad)).astype(bf16)
    b1 = _pad_to(params["dec_b1"].reshape(1, -1), (1, h_pad)).astype(f32)
    w2_row = _pad_to(params["dec_w2"].reshape(1, -1), (1, h_pad)).astype(bf16)
    b2 = params["dec_b2"].reshape(1, 1).astype(f32)
    h_bf16 = graph_embed_pad.astype(bf16)          # small, VMEM-resident table

    res_row = pl.pallas_call(
        _decoder_kernel,
        out_shape=jax.ShapeDtypeStruct((1, p_pad), jnp.float32),
        grid=(p_pad // _PAIR_TILE,),
        in_specs=[
            pl.BlockSpec((_PAIR_TILE, 1), lambda i: (i, 0)),      # druga ids
            pl.BlockSpec((_PAIR_TILE, 1), lambda i: (i, 0)),      # drugb ids
            pl.BlockSpec((_PAIR_TILE, 1), lambda i: (i, 0)),      # cellline ids
            pl.BlockSpec((n_nodes, e_pad), lambda i: (0, 0)),     # graph embed
            pl.BlockSpec((e_pad, h_pad), lambda i: (0, 0)),       # w1a
            pl.BlockSpec((e_pad, h_pad), lambda i: (0, 0)),       # w1b
            pl.BlockSpec((e_pad, h_pad), lambda i: (0, 0)),       # w1c
            pl.BlockSpec((1, h_pad), lambda i: (0, 0)),           # b1
            pl.BlockSpec((1, h_pad), lambda i: (0, 0)),           # w2 row
            pl.BlockSpec(memory_space=pltpu.MemorySpace.SMEM),    # b2 scalar
        ],
        out_specs=pl.BlockSpec((1, _PAIR_TILE), lambda i: (0, i)),
        compiler_params=pltpu.CompilerParams(
            dimension_semantics=("parallel",)),
    )(ida, idb, idc, h_bf16, w1a, w1b, w1c, b1, w2_row, b2)

    res = res_row[0, :npairs]                       # strip pair padding
    graph_embed = graph_embed_pad[:, :embed]        # strip lane padding
    return res, emb_loss, graph_embed


# ----------------------------------------------------------------------------
# Example run
# ----------------------------------------------------------------------------
if __name__ == "__main__":
    key = jax.random.PRNGKey(0)
    n_drug, n_cline = 4, 3
    atoms_per_drug = 4
    n_atoms = n_drug * atoms_per_drug
    drug_fdim, gexpr_dim, hidden, embed = 8, 16, 32, 32
    npairs = 6

    ks = jax.random.split(key, 8)

    # Atom-level drug features and block-diagonal, row-normalised atom adjacency.
    drug_feature = jax.random.normal(ks[0], (n_atoms, drug_fdim), jnp.float32)
    ibatch = jnp.repeat(jnp.arange(n_drug, dtype=jnp.int32), atoms_per_drug)
    drug_adj = (ibatch[:, None] == ibatch[None, :]).astype(jnp.float32)
    drug_adj = drug_adj / jnp.sum(drug_adj, axis=1, keepdims=True)

    # Cell-line gene expression.
    gexpr_data = jax.random.normal(ks[1], (n_cline, gexpr_dim), jnp.float32)

    # Merged-node (hyper)graph adjacency, row-normalised.
    n_nodes = n_drug + n_cline
    adj_raw = jax.random.uniform(ks[2], (n_nodes, n_nodes), jnp.float32)
    adj = 0.5 * (adj_raw + adj_raw.T) + jnp.eye(n_nodes, dtype=jnp.float32)
    adj = adj / jnp.sum(adj, axis=1, keepdims=True)

    # Similarity matrices (symmetric, unit diagonal).
    dsim = jax.random.uniform(ks[3], (n_drug, n_drug), jnp.float32)
    drug_sim_mat = 0.5 * (dsim + dsim.T)
    drug_sim_mat = drug_sim_mat.at[jnp.arange(n_drug), jnp.arange(n_drug)].set(1.0)
    csim = jax.random.uniform(ks[4], (n_cline, n_cline), jnp.float32)
    cline_sim_mat = 0.5 * (csim + csim.T)
    cline_sim_mat = cline_sim_mat.at[jnp.arange(n_cline), jnp.arange(n_cline)].set(1.0)

    # Synergy triples (cell-line ids are offsets into the merged embedding).
    druga_id = jax.random.randint(ks[5], (npairs,), 0, n_drug)
    drugb_id = jax.random.randint(ks[6], (npairs,), 0, n_drug)
    cellline_id = n_drug + jax.random.randint(ks[7], (npairs,), 0, n_cline)

    params = init_params(jax.random.PRNGKey(42), drug_fdim, gexpr_dim, hidden, embed)

    fwd = jax.jit(functools.partial(hypergraph_synergy_forward, params,
                                    n_drug=n_drug))
    res, emb_loss, h = fwd(drug_feature, drug_adj, ibatch, gexpr_data, adj,
                           drug_sim_mat, cline_sim_mat,
                           druga_id, drugb_id, cellline_id)
    jax.block_until_ready((res, emb_loss, h))

    assert res.shape == (npairs,)
    assert emb_loss.shape == ()
    assert h.shape == (n_nodes, embed)
    assert bool(jnp.all(jnp.isfinite(res)))
    assert bool(jnp.all((res >= 0.0) & (res <= 1.0)))
    assert bool(jnp.isfinite(emb_loss))
    print("KERNEL_OK")
</pallas_src>

<mosaic_0001>
module attributes {stable_mosaic.version = 11 : i64} {
  func.func @_encoder_loss_kernel(%arg0: memref<16x8xbf16, #tpu.memory_space<vmem>>, %arg1: memref<16x16xbf16, #tpu.memory_space<vmem>>, %arg2: memref<4x16xbf16, #tpu.memory_space<vmem>>, %arg3: memref<4x1xf32, #tpu.memory_space<vmem>>, %arg4: memref<3x16xbf16, #tpu.memory_space<vmem>>, %arg5: memref<7x4xbf16, #tpu.memory_space<vmem>>, %arg6: memref<7x3xbf16, #tpu.memory_space<vmem>>, %arg7: memref<4x4xf32, #tpu.memory_space<vmem>>, %arg8: memref<3x3xf32, #tpu.memory_space<vmem>>, %arg9: memref<8x128xbf16, #tpu.memory_space<vmem>>, %arg10: memref<128x128xbf16, #tpu.memory_space<vmem>>, %arg11: memref<128x128xbf16, #tpu.memory_space<vmem>>, %arg12: memref<1x128xf32, #tpu.memory_space<vmem>>, %arg13: memref<16x128xbf16, #tpu.memory_space<vmem>>, %arg14: memref<1x128xf32, #tpu.memory_space<vmem>>, %arg15: memref<128x128xbf16, #tpu.memory_space<vmem>>, %arg16: memref<1x128xf32, #tpu.memory_space<vmem>>, %arg17: memref<128x128xbf16, #tpu.memory_space<vmem>>, %arg18: memref<128x128xbf16, #tpu.memory_space<vmem>>, %arg19: memref<7x128xf32, #tpu.memory_space<vmem>>, %arg20: memref<1x1xf32, #tpu.memory_space<smem>>) attributes {dimension_semantics = [], scalar_prefetch = 0 : i64, scratch_operands = 0 : i64, tpu.core_type = #tpu.core_type<tc>} {
    %c0 = arith.constant 0 : index
    %c0_0 = arith.constant 0 : index
    %0 = vector.load %arg1[%c0, %c0_0] : memref<16x16xbf16, #tpu.memory_space<vmem>>, vector<16x16xbf16>
    %c0_1 = arith.constant 0 : index
    %c0_2 = arith.constant 0 : index
    %1 = vector.load %arg0[%c0_1, %c0_2] : memref<16x8xbf16, #tpu.memory_space<vmem>>, vector<16x8xbf16>
    %c0_3 = arith.constant 0 : index
    %c0_4 = arith.constant 0 : index
    %2 = vector.load %arg9[%c0_3, %c0_4] : memref<8x128xbf16, #tpu.memory_space<vmem>>, vector<8x128xbf16>
    %cst = arith.constant dense<0.000000e+00> : vector<16x128xf32>
    %3 = tpu.matmul %1, %2, %cst {dimension_numbers = #tpu.dot_dimension_numbers<[1], [0], [0], [1], [0, 0, 1, 1], [], []>} : vector<16x8xbf16>, vector<8x128xbf16>, vector<16x128xf32> -> vector<16x128xf32>
    %4 = arith.truncf %3 : vector<16x128xf32> to vector<16x128xbf16>
    %cst_5 = arith.constant dense<0.000000e+00> : vector<16x128xf32>
    %5 = tpu.matmul %0, %4, %cst_5 {dimension_numbers = #tpu.dot_dimension_numbers<[1], [0], [0], [1], [0, 0, 1, 1], [], []>} : vector<16x16xbf16>, vector<16x128xbf16>, vector<16x128xf32> -> vector<16x128xf32>
    %cst_6 = arith.constant 0.000000e+00 : f32
    %6 = vector.broadcast %cst_6 : f32 to vector<16x128xf32>
    %7 = arith.maximumf %5, %6 : vector<16x128xf32>
    %c0_7 = arith.constant 0 : index
    %c0_8 = arith.constant 0 : index
    %8 = vector.load %arg10[%c0_7, %c0_8] : memref<128x128xbf16, #tpu.memory_space<vmem>>, vector<128x128xbf16>
    %9 = arith.truncf %7 : vector<16x128xf32> to vector<16x128xbf16>
    %cst_9 = arith.constant dense<0.000000e+00> : vector<16x128xf32>
    %10 = tpu.matmul %9, %8, %cst_9 {dimension_numbers = #tpu.dot_dimension_numbers<[1], [0], [0], [1], [0, 0, 1, 1], [], []>} : vector<16x128xbf16>, vector<128x128xbf16>, vector<16x128xf32> -> vector<16x128xf32>
    %11 = arith.truncf %10 : vector<16x128xf32> to vector<16x128xbf16>
    %cst_10 = arith.constant dense<0.000000e+00> : vector<16x128xf32>
    %12 = tpu.matmul %0, %11, %cst_10 {dimension_numbers = #tpu.dot_dimension_numbers<[1], [0], [0], [1], [0, 0, 1, 1], [], []>} : vector<16x16xbf16>, vector<16x128xbf16>, vector<16x128xf32> -> vector<16x128xf32>
    %cst_11 = arith.constant 0.000000e+00 : f32
    %13 = vector.broadcast %cst_11 : f32 to vector<16x128xf32>
    %14 = arith.maximumf %12, %13 : vector<16x128xf32>
    %c0_12 = arith.constant 0 : index
    %c0_13 = arith.constant 0 : index
    %15 = vector.load %arg2[%c0_12, %c0_13] : memref<4x16xbf16, #tpu.memory_space<vmem>>, vector<4x16xbf16>
    %16 = arith.truncf %14 : vector<16x128xf32> to vector<16x128xbf16>
    %cst_14 = arith.constant dense<0.000000e+00> : vector<4x128xf32>
    %17 = tpu.matmul %15, %16, %cst_14 {dimension_numbers = #tpu.dot_dimension_numbers<[1], [0], [0], [1], [0, 0, 1, 1], [], []>} : vector<4x16xbf16>, vector<16x128xbf16>, vector<4x128xf32> -> vector<4x128xf32>
    %c0_15 = arith.constant 0 : index
    %c0_16 = arith.constant 0 : index
    %18 = vector.load %arg3[%c0_15, %c0_16] : memref<4x1xf32, #tpu.memory_space<vmem>>, vector<4x1xf32>
    %19 = vector.broadcast %18 : vector<4x1xf32> to vector<4x128xf32>
    %20 = arith.mulf %17, %19 : vector<4x128xf32>
    %c0_17 = arith.constant 0 : index
    %c0_18 = arith.constant 0 : index
    %21 = vector.load %arg11[%c0_17, %c0_18] : memref<128x128xbf16, #tpu.memory_space<vmem>>, vector<128x128xbf16>
    %22 = arith.truncf %20 : vector<4x128xf32> to vector<4x128xbf16>
    %cst_19 = arith.constant dense<0.000000e+00> : vector<4x128xf32>
    %23 = tpu.matmul %22, %21, %cst_19 {dimension_numbers = #tpu.dot_dimension_numbers<[1], [0], [0], [1], [0, 0, 1, 1], [], []>} : vector<4x128xbf16>, vector<128x128xbf16>, vector<4x128xf32> -> vector<4x128xf32>
    %c0_20 = arith.constant 0 : index
    %c0_21 = arith.constant 0 : index
    %24 = vector.load %arg12[%c0_20, %c0_21] : memref<1x128xf32, #tpu.memory_space<vmem>>, vector<1x128xf32>
    %25 = vector.broadcast %24 : vector<1x128xf32> to vector<4x128xf32>
    %26 = arith.addf %23, %25 : vector<4x128xf32>
    %cst_22 = arith.constant 0.000000e+00 : f32
    %27 = vector.broadcast %cst_22 : f32 to vector<4x128xf32>
    %28 = arith.maximumf %26, %27 : vector<4x128xf32>
    %c0_23 = arith.constant 0 : index
    %c0_24 = arith.constant 0 : index
    %29 = vector.load %arg4[%c0_23, %c0_24] : memref<3x16xbf16, #tpu.memory_space<vmem>>, vector<3x16xbf16>
    %c0_25 = arith.constant 0 : index
    %c0_26 = arith.constant 0 : index
    %30 = vector.load %arg13[%c0_25, %c0_26] : memref<16x128xbf16, #tpu.memory_space<vmem>>, vector<16x128xbf16>
    %cst_27 = arith.constant dense<0.000000e+00> : vector<3x128xf32>
    %31 = tpu.matmul %29, %30, %cst_27 {dimension_numbers = #tpu.dot_dimension_numbers<[1], [0], [0], [1], [0, 0, 1, 1], [], []>} : vector<3x16xbf16>, vector<16x128xbf16>, vector<3x128xf32> -> vector<3x128xf32>
    %c0_28 = arith.constant 0 : index
    %c0_29 = arith.constant 0 : index
    %32 = vector.load %arg14[%c0_28, %c0_29] : memref<1x128xf32, #tpu.memory_space<vmem>>, vector<1x128xf32>
    %33 = vector.broadcast %32 : vector<1x128xf32> to vector<3x128xf32>
    %34 = arith.addf %31, %33 : vector<3x128xf32>
    %35 = math.tanh %34 : vector<3x128xf32>
    %c0_30 = arith.constant 0 : index
    %c0_31 = arith.constant 0 : index
    %36 = vector.load %arg15[%c0_30, %c0_31] : memref<128x128xbf16, #tpu.memory_space<vmem>>, vector<128x128xbf16>
    %37 = arith.truncf %35 : vector<3x128xf32> to vector<3x128xbf16>
    %cst_32 = arith.constant dense<0.000000e+00> : vector<3x128xf32>
    %38 = tpu.matmul %37, %36, %cst_32 {dimension_numbers = #tpu.dot_dimension_numbers<[1], [0], [0], [1], [0, 0, 1, 1], [], []>} : vector<3x128xbf16>, vector<128x128xbf16>, vector<3x128xf32> -> vector<3x128xf32>
    %c0_33 = arith.constant 0 : index
    %c0_34 = arith.constant 0 : index
    %39 = vector.load %arg16[%c0_33, %c0_34] : memref<1x128xf32, #tpu.memory_space<vmem>>, vector<1x128xf32>
    %40 = vector.broadcast %39 : vector<1x128xf32> to vector<3x128xf32>
    %41 = arith.addf %38, %40 : vector<3x128xf32>
    %cst_35 = arith.constant 0.000000e+00 : f32
    %42 = vector.broadcast %cst_35 : f32 to vector<3x128xf32>
    %43 = arith.maximumf %41, %42 : vector<3x128xf32>
    %c0_36 = arith.constant 0 : index
    %c0_37 = arith.constant 0 : index
    %44 = vector.load %arg17[%c0_36, %c0_37] : memref<128x128xbf16, #tpu.memory_space<vmem>>, vector<128x128xbf16>
    %c0_38 = arith.constant 0 : index
    %c0_39 = arith.constant 0 : index
    %45 = vector.load %arg5[%c0_38, %c0_39] : memref<7x4xbf16, #tpu.memory_space<vmem>>, vector<7x4xbf16>
    %46 = arith.truncf %28 : vector<4x128xf32> to vector<4x128xbf16>
    %cst_40 = arith.constant dense<0.000000e+00> : vector<4x128xf32>
    %47 = tpu.matmul %46, %44, %cst_40 {dimension_numbers = #tpu.dot_dimension_numbers<[1], [0], [0], [1], [0, 0, 1, 1], [], []>} : vector<4x128xbf16>, vector<128x128xbf16>, vector<4x128xf32> -> vector<4x128xf32>
    %48 = arith.truncf %47 : vector<4x128xf32> to vector<4x128xbf16>
    %cst_41 = arith.constant dense<0.000000e+00> : vector<7x128xf32>
    %49 = tpu.matmul %45, %48, %cst_41 {dimension_numbers = #tpu.dot_dimension_numbers<[1], [0], [0], [1], [0, 0, 1, 1], [], []>} : vector<7x4xbf16>, vector<4x128xbf16>, vector<7x128xf32> -> vector<7x128xf32>
    %c0_42 = arith.constant 0 : index
    %c0_43 = arith.constant 0 : index
    %50 = vector.load %arg6[%c0_42, %c0_43] : memref<7x3xbf16, #tpu.memory_space<vmem>>, vector<7x3xbf16>
    %51 = arith.truncf %43 : vector<3x128xf32> to vector<3x128xbf16>
    %cst_44 = arith.constant dense<0.000000e+00> : vector<3x128xf32>
    %52 = tpu.matmul %51, %44, %cst_44 {dimension_numbers = #tpu.dot_dimension_numbers<[1], [0], [0], [1], [0, 0, 1, 1], [], []>} : vector<3x128xbf16>, vector<128x128xbf16>, vector<3x128xf32> -> vector<3x128xf32>
    %53 = arith.truncf %52 : vector<3x128xf32> to vector<3x128xbf16>
    %cst_45 = arith.constant dense<0.000000e+00> : vector<7x128xf32>
    %54 = tpu.matmul %50, %53, %cst_45 {dimension_numbers = #tpu.dot_dimension_numbers<[1], [0], [0], [1], [0, 0, 1, 1], [], []>} : vector<7x3xbf16>, vector<3x128xbf16>, vector<7x128xf32> -> vector<7x128xf32>
    %55 = arith.addf %49, %54 : vector<7x128xf32>
    %56 = math.tanh %55 : vector<7x128xf32>
    %c0_46 = arith.constant 0 : index
    %c0_47 = arith.constant 0 : index
    %57 = vector.load %arg18[%c0_46, %c0_47] : memref<128x128xbf16, #tpu.memory_space<vmem>>, vector<128x128xbf16>
    %58 = arith.truncf %56 : vector<7x128xf32> to vector<7x128xbf16>
    %cst_48 = arith.constant dense<0.000000e+00> : vector<7x128xf32>
    %59 = tpu.matmul %58, %57, %cst_48 {dimension_numbers = #tpu.dot_dimension_numbers<[1], [0], [0], [1], [0, 0, 1, 1], [], []>} : vector<7x128xbf16>, vector<128x128xbf16>, vector<7x128xf32> -> vector<7x128xf32>
    %c0_49 = arith.constant 0 : index
    %c0_50 = arith.constant 0 : index
    %60 = vector.load %arg5[%c0_49, %c0_50] : memref<7x4xbf16, #tpu.memory_space<vmem>>, vector<7x4xbf16>
    %61 = vector.extract_strided_slice %59 {offsets = [0, 0], sizes = [4, 128], strides = [1, 1]} : vector<7x128xf32> to vector<4x128xf32>
    %62 = arith.truncf %61 : vector<4x128xf32> to vector<4x128xbf16>
    %cst_51 = arith.constant dense<0.000000e+00> : vector<7x128xf32>
    %63 = tpu.matmul %60, %62, %cst_51 {dimension_numbers = #tpu.dot_dimension_numbers<[1], [0], [0], [1], [0, 0, 1, 1], [], []>} : vector<7x4xbf16>, vector<4x128xbf16>, vector<7x128xf32> -> vector<7x128xf32>
    %c0_52 = arith.constant 0 : index
    %c0_53 = arith.constant 0 : index
    %64 = vector.load %arg6[%c0_52, %c0_53] : memref<7x3xbf16, #tpu.memory_space<vmem>>, vector<7x3xbf16>
    %65 = vector.extract_strided_slice %59 {offsets = [4, 0], sizes = [3, 128], strides = [1, 1]} : vector<7x128xf32> to vector<3x128xf32>
    %66 = arith.truncf %65 : vector<3x128xf32> to vector<3x128xbf16>
    %cst_54 = arith.constant dense<0.000000e+00> : vector<7x128xf32>
    %67 = tpu.matmul %64, %66, %cst_54 {dimension_numbers = #tpu.dot_dimension_numbers<[1], [0], [0], [1], [0, 0, 1, 1], [], []>} : vector<7x3xbf16>, vector<3x128xbf16>, vector<7x128xf32> -> vector<7x128xf32>
    %68 = arith.addf %63, %67 : vector<7x128xf32>
    %69 = math.tanh %68 : vector<7x128xf32>
    %c0_55 = arith.constant 0 : index
    %c0_56 = arith.constant 0 : index
    %70 = vector.load %arg19[%c0_55, %c0_56] : memref<7x128xf32, #tpu.memory_space<vmem>>, vector<7x128xf32>
    tpu.vector_store %arg19[%c0_55, %c0_56], %69 {strides = array<i32>} : memref<7x128xf32, #tpu.memory_space<vmem>>, vector<7x128xf32>,
    %71 = vector.extract_strided_slice %69 {offsets = [0, 0], sizes = [4, 128], strides = [1, 1]} : vector<7x128xf32> to vector<4x128xf32>
    %72 = vector.extract_strided_slice %69 {offsets = [4, 0], sizes = [3, 128], strides = [1, 1]} : vector<7x128xf32> to vector<3x128xf32>
    %73 = arith.truncf %71 : vector<4x128xf32> to vector<4x128xbf16>
    %74 = arith.truncf %71 : vector<4x128xf32> to vector<4x128xbf16>
    %cst_57 = arith.constant dense<0.000000e+00> : vector<4x4xf32>
    %75 = tpu.matmul %73, %74, %cst_57 {dimension_numbers = #tpu.dot_dimension_numbers<[1], [1], [0], [0], [0, 0, 1, 0], [], []>} : vector<4x128xbf16>, vector<4x128xbf16>, vector<4x4xf32> -> vector<4x4xf32>
    %cst_58 = arith.constant 0.000000e+00 : f32
    %76 = vector.broadcast %cst_58 : f32 to vector<4x4xf32>
    %77 = arith.subf %76, %75 : vector<4x4xf32>
    %78 = math.exp %77 : vector<4x4xf32>
    %cst_59 = arith.constant 1.000000e+00 : f32
    %79 = vector.broadcast %cst_59 : f32 to vector<4x4xf32>
    %80 = arith.addf %79, %78 : vector<4x4xf32>
    %cst_60 = arith.constant 1.000000e+00 : f32
    %81 = vector.broadcast %cst_60 : f32 to vector<4x4xf32>
    %82 = arith.divf %81, %80 : vector<4x4xf32>
    %c0_61 = arith.constant 0 : index
    %c0_62 = arith.constant 0 : index
    %83 = vector.load %arg7[%c0_61, %c0_62] : memref<4x4xf32, #tpu.memory_space<vmem>>, vector<4x4xf32>
    %84 = arith.subf %82, %83 : vector<4x4xf32>
    %85 = arith.truncf %72 : vector<3x128xf32> to vector<3x128xbf16>
    %86 = arith.truncf %72 : vector<3x128xf32> to vector<3x128xbf16>
    %cst_63 = arith.constant dense<0.000000e+00> : vector<3x3xf32>
    %87 = tpu.matmul %85, %86, %cst_63 {dimension_numbers = #tpu.dot_dimension_numbers<[1], [1], [0], [0], [0, 0, 1, 0], [], []>} : vector<3x128xbf16>, vector<3x128xbf16>, vector<3x3xf32> -> vector<3x3xf32>
    %cst_64 = arith.constant 0.000000e+00 : f32
    %88 = vector.broadcast %cst_64 : f32 to vector<3x3xf32>
    %89 = arith.subf %88, %87 : vector<3x3xf32>
    %90 = math.exp %89 : vector<3x3xf32>
    %cst_65 = arith.constant 1.000000e+00 : f32
    %91 = vector.broadcast %cst_65 : f32 to vector<3x3xf32>
    %92 = arith.addf %91, %90 : vector<3x3xf32>
    %cst_66 = arith.constant 1.000000e+00 : f32
    %93 = vector.broadcast %cst_66 : f32 to vector<3x3xf32>
    %94 = arith.divf %93, %92 : vector<3x3xf32>
    %c0_67 = arith.constant 0 : index
    %c0_68 = arith.constant 0 : index
    %95 = vector.load %arg8[%c0_67, %c0_68] : memref<3x3xf32, #tpu.memory_space<vmem>>, vector<3x3xf32>
    %96 = arith.subf %94, %95 : vector<3x3xf32>
    %97 = arith.mulf %84, %84 : vector<4x4xf32>
    %98 = vector.shape_cast %97 : vector<4x4xf32> to vector<1x4x4xf32>
    %cst_69 = arith.constant dense<0.000000e+00> : vector<1xf32>
    %99 = vector.multi_reduction <add>, %98, %cst_69 [1, 2] : vector<1x4x4xf32> to vector<1xf32>
    %100 = vector.shape_cast %99 : vector<1xf32> to vector<1x1x1xf32>
    %101 = vector.extract %100[0, 0, 0] : f32 from vector<1x1x1xf32>
    %cst_70 = arith.constant 1.600000e+01 : f32
    %102 = arith.divf %101, %cst_70 : f32
    %103 = arith.mulf %96, %96 : vector<3x3xf32>
    %104 = vector.shape_cast %103 : vector<3x3xf32> to vector<1x3x3xf32>
    %cst_71 = arith.constant dense<0.000000e+00> : vector<1xf32>
    %105 = vector.multi_reduction <add>, %104, %cst_71 [1, 2] : vector<1x3x3xf32> to vector<1xf32>
    %106 = vector.shape_cast %105 : vector<1xf32> to vector<1x1x1xf32>
    %107 = vector.extract %106[0, 0, 0] : f32 from vector<1x1x1xf32>
    %cst_72 = arith.constant 9.000000e+00 : f32
    %108 = arith.divf %107, %cst_72 : f32
    %109 = arith.addf %102, %108 : f32
    %c0_73 = arith.constant 0 : index
    %c0_74 = arith.constant 0 : index
    %110 = memref.load %arg20[%c0_73, %c0_74] : memref<1x1xf32, #tpu.memory_space<smem>>
    memref.store %109, %arg20[%c0_73, %c0_74] : memref<1x1xf32, #tpu.memory_space<smem>>
    return
  }
}

module attributes {stable_mosaic.version = 11 : i64} {
  func.func @_decoder_kernel(%arg0: i32, %arg1: memref<128x1xi32, #tpu.memory_space<vmem>>, %arg2: memref<128x1xi32, #tpu.memory_space<vmem>>, %arg3: memref<128x1xi32, #tpu.memory_space<vmem>>, %arg4: memref<7x128xbf16, #tpu.memory_space<vmem>>, %arg5: memref<128x128xbf16, #tpu.memory_space<vmem>>, %arg6: memref<128x128xbf16, #tpu.memory_space<vmem>>, %arg7: memref<128x128xbf16, #tpu.memory_space<vmem>>, %arg8: memref<1x128xf32, #tpu.memory_space<vmem>>, %arg9: memref<1x128xbf16, #tpu.memory_space<vmem>>, %arg10: memref<1x1xf32, #tpu.memory_space<smem>>, %arg11: memref<1x128xf32, #tpu.memory_space<vmem>>) attributes {dimension_semantics = [#tpu.dimension_semantics<parallel>], iteration_bounds = array<i64: 1>, scalar_prefetch = 0 : i64, scratch_operands = 0 : i64, tpu.core_type = #tpu.core_type<tc>, window_params = [{transform_indices = @transform_0, window_bounds = array<i64: 128, 1>}, {transform_indices = @transform_1, window_bounds = array<i64: 128, 1>}, {transform_indices = @transform_2, window_bounds = array<i64: 128, 1>}, {pipeline_mode = #tpu.pipeline_mode<synchronous>, transform_indices = @transform_3, window_bounds = array<i64: 7, 128>}, {pipeline_mode = #tpu.pipeline_mode<synchronous>, transform_indices = @transform_4, window_bounds = array<i64: 128, 128>}, {pipeline_mode = #tpu.pipeline_mode<synchronous>, transform_indices = @transform_5, window_bounds = array<i64: 128, 128>}, {pipeline_mode = #tpu.pipeline_mode<synchronous>, transform_indices = @transform_6, window_bounds = array<i64: 128, 128>}, {pipeline_mode = #tpu.pipeline_mode<synchronous>, transform_indices = @transform_7, window_bounds = array<i64: 1, 128>}, {pipeline_mode = #tpu.pipeline_mode<synchronous>, transform_indices = @transform_8, window_bounds = array<i64: 1, 128>}, {transform_indices = @transform_9, window_bounds = array<i64: 1, 1>}, {transform_indices = @transform_10, window_bounds = array<i64: 1, 128>}]} {
    %0 = tpu.iota {dimensions = array<i32: 1>} : vector<128x7xi32>
    %c0 = arith.constant 0 : index
    %c0_0 = arith.constant 0 : index
    %1 = vector.load %arg4[%c0, %c0_0] : memref<7x128xbf16, #tpu.memory_space<vmem>>, vector<7x128xbf16>
    %c0_1 = arith.constant 0 : index
    %c0_2 = arith.constant 0 : index
    %2 = vector.load %arg1[%c0_1, %c0_2] : memref<128x1xi32, #tpu.memory_space<vmem>>, vector<128x1xi32>
    %3 = vector.broadcast %2 : vector<128x1xi32> to vector<128x7xi32>
    %4 = arith.cmpi eq, %3, %0 : vector<128x7xi32>
    %5 = arith.extui %4 : vector<128x7xi1> to vector<128x7xi32>
    %6 = arith.sitofp %5 : vector<128x7xi32> to vector<128x7xf32>
    %7 = arith.truncf %6 : vector<128x7xf32> to vector<128x7xbf16>
    %cst = arith.constant dense<0.000000e+00> : vector<128x128xf32>
    %8 = tpu.matmul %7, %1, %cst {dimension_numbers = #tpu.dot_dimension_numbers<[1], [0], [0], [1], [0, 0, 1, 1], [], []>} : vector<128x7xbf16>, vector<7x128xbf16>, vector<128x128xf32> -> vector<128x128xf32>
    %c0_3 = arith.constant 0 : index
    %c0_4 = arith.constant 0 : index
    %9 = vector.load %arg5[%c0_3, %c0_4] : memref<128x128xbf16, #tpu.memory_space<vmem>>, vector<128x128xbf16>
    %10 = arith.truncf %8 : vector<128x128xf32> to vector<128x128xbf16>
    %cst_5 = arith.constant dense<0.000000e+00> : vector<128x128xf32>
    %11 = tpu.matmul %10, %9, %cst_5 {dimension_numbers = #tpu.dot_dimension_numbers<[1], [0], [0], [1], [0, 0, 1, 1], [], []>} : vector<128x128xbf16>, vector<128x128xbf16>, vector<128x128xf32> -> vector<128x128xf32>
    %c0_6 = arith.constant 0 : index
    %c0_7 = arith.constant 0 : index
    %12 = vector.load %arg2[%c0_6, %c0_7] : memref<128x1xi32, #tpu.memory_space<vmem>>, vector<128x1xi32>
    %13 = vector.broadcast %12 : vector<128x1xi32> to vector<128x7xi32>
    %14 = arith.cmpi eq, %13, %0 : vector<128x7xi32>
    %15 = arith.extui %14 : vector<128x7xi1> to vector<128x7xi32>
    %16 = arith.sitofp %15 : vector<128x7xi32> to vector<128x7xf32>
    %17 = arith.truncf %16 : vector<128x7xf32> to vector<128x7xbf16>
    %cst_8 = arith.constant dense<0.000000e+00> : vector<128x128xf32>
    %18 = tpu.matmul %17, %1, %cst_8 {dimension_numbers = #tpu.dot_dimension_numbers<[1], [0], [0], [1], [0, 0, 1, 1], [], []>} : vector<128x7xbf16>, vector<7x128xbf16>, vector<128x128xf32> -> vector<128x128xf32>
    %c0_9 = arith.constant 0 : index
    %c0_10 = arith.constant 0 : index
    %19 = vector.load %arg6[%c0_9, %c0_10] : memref<128x128xbf16, #tpu.memory_space<vmem>>, vector<128x128xbf16>
    %20 = arith.truncf %18 : vector<128x128xf32> to vector<128x128xbf16>
    %cst_11 = arith.constant dense<0.000000e+00> : vector<128x128xf32>
    %21 = tpu.matmul %20, %19, %cst_11 {dimension_numbers = #tpu.dot_dimension_numbers<[1], [0], [0], [1], [0, 0, 1, 1], [], []>} : vector<128x128xbf16>, vector<128x128xbf16>, vector<128x128xf32> -> vector<128x128xf32>
    %22 = arith.addf %11, %21 : vector<128x128xf32>
    %c0_12 = arith.constant 0 : index
    %c0_13 = arith.constant 0 : index
    %23 = vector.load %arg3[%c0_12, %c0_13] : memref<128x1xi32, #tpu.memory_space<vmem>>, vector<128x1xi32>
    %24 = vector.broadcast %23 : vector<128x1xi32> to vector<128x7xi32>
    %25 = arith.cmpi eq, %24, %0 : vector<128x7xi32>
    %26 = arith.extui %25 : vector<128x7xi1> to vector<128x7xi32>
    %27 = arith.sitofp %26 : vector<128x7xi32> to vector<128x7xf32>
    %28 = arith.truncf %27 : vector<128x7xf32> to vector<128x7xbf16>
    %cst_14 = arith.constant dense<0.000000e+00> : vector<128x128xf32>
    %29 = tpu.matmul %28, %1, %cst_14 {dimension_numbers = #tpu.dot_dimension_numbers<[1], [0], [0], [1], [0, 0, 1, 1], [], []>} : vector<128x7xbf16>, vector<7x128xbf16>, vector<128x128xf32> -> vector<128x128xf32>
    %c0_15 = arith.constant 0 : index
    %c0_16 = arith.constant 0 : index
    %30 = vector.load %arg7[%c0_15, %c0_16] : memref<128x128xbf16, #tpu.memory_space<vmem>>, vector<128x128xbf16>
    %31 = arith.truncf %29 : vector<128x128xf32> to vector<128x128xbf16>
    %cst_17 = arith.constant dense<0.000000e+00> : vector<128x128xf32>
    %32 = tpu.matmul %31, %30, %cst_17 {dimension_numbers = #tpu.dot_dimension_numbers<[1], [0], [0], [1], [0, 0, 1, 1], [], []>} : vector<128x128xbf16>, vector<128x128xbf16>, vector<128x128xf32> -> vector<128x128xf32>
    %33 = arith.addf %22, %32 : vector<128x128xf32>
    %c0_18 = arith.constant 0 : index
    %c0_19 = arith.constant 0 : index
    %34 = vector.load %arg8[%c0_18, %c0_19] : memref<1x128xf32, #tpu.memory_space<vmem>>, vector<1x128xf32>
    %35 = vector.broadcast %34 : vector<1x128xf32> to vector<128x128xf32>
    %36 = arith.addf %33, %35 : vector<128x128xf32>
    %cst_20 = arith.constant 0.000000e+00 : f32
    %37 = vector.broadcast %cst_20 : f32 to vector<128x128xf32>
    %38 = arith.maximumf %36, %37 : vector<128x128xf32>
    %c0_21 = arith.constant 0 : index
    %c0_22 = arith.constant 0 : index
    %39 = vector.load %arg9[%c0_21, %c0_22] : memref<1x128xbf16, #tpu.memory_space<vmem>>, vector<1x128xbf16>
    %40 = arith.truncf %38 : vector<128x128xf32> to vector<128x128xbf16>
    %cst_23 = arith.constant dense<0.000000e+00> : vector<1x128xf32>
    %41 = tpu.matmul %39, %40, %cst_23 {dimension_numbers = #tpu.dot_dimension_numbers<[1], [1], [0], [0], [0, 0, 1, 0], [], []>} : vector<1x128xbf16>, vector<128x128xbf16>, vector<1x128xf32> -> vector<1x128xf32>
    %c0_24 = arith.constant 0 : index
    %c0_25 = arith.constant 0 : index
    %42 = memref.load %arg10[%c0_24, %c0_25] : memref<1x1xf32, #tpu.memory_space<smem>>
    %43 = vector.broadcast %42 : f32 to vector<1x128xf32>
    %44 = arith.addf %41, %43 : vector<1x128xf32>
    %cst_26 = arith.constant 0.000000e+00 : f32
    %45 = vector.broadcast %cst_26 : f32 to vector<1x128xf32>
    %46 = arith.subf %45, %44 : vector<1x128xf32>
    %47 = math.exp %46 : vector<1x128xf32>
    %cst_27 = arith.constant 1.000000e+00 : f32
    %48 = vector.broadcast %cst_27 : f32 to vector<1x128xf32>
    %49 = arith.addf %48, %47 : vector<1x128xf32>
    %cst_28 = arith.constant 1.000000e+00 : f32
    %50 = vector.broadcast %cst_28 : f32 to vector<1x128xf32>
    %51 = arith.divf %50, %49 : vector<1x128xf32>
    %c0_29 = arith.constant 0 : index
    %c0_30 = arith.constant 0 : index
    %52 = vector.load %arg11[%c0_29, %c0_30] : memref<1x128xf32, #tpu.memory_space<vmem>>, vector<1x128xf32>
    tpu.vector_store %arg11[%c0_29, %c0_30], %51 {strides = array<i32>} : memref<1x128xf32, #tpu.memory_space<vmem>>, vector<1x128xf32>,
    return
  }
  func.func @transform_0(%arg0: i32) -> (i32, i32) {
    %c0_i32 = arith.constant 0 : i32
    %c0_i32_0 = arith.constant 0 : i32
    return %arg0, %c0_i32 : i32, i32
  }
  func.func @transform_1(%arg0: i32) -> (i32, i32) {
    %c0_i32 = arith.constant 0 : i32
    %c0_i32_0 = arith.constant 0 : i32
    return %arg0, %c0_i32 : i32, i32
  }
  func.func @transform_2(%arg0: i32) -> (i32, i32) {
    %c0_i32 = arith.constant 0 : i32
    %c0_i32_0 = arith.constant 0 : i32
    return %arg0, %c0_i32 : i32, i32
  }
  func.func @transform_3(%arg0: i32) -> (i32, i32) {
    %c0_i32 = arith.constant 0 : i32
    %c0_i32_0 = arith.constant 0 : i32
    %c0_i32_1 = arith.constant 0 : i32
    return %c0_i32, %c0_i32_0 : i32, i32
  }
  func.func @transform_4(%arg0: i32) -> (i32, i32) {
    %c0_i32 = arith.constant 0 : i32
    %c0_i32_0 = arith.constant 0 : i32
    %c0_i32_1 = arith.constant 0 : i32
    return %c0_i32, %c0_i32_0 : i32, i32
  }
  func.func @transform_5(%arg0: i32) -> (i32, i32) {
    %c0_i32 = arith.constant 0 : i32
    %c0_i32_0 = arith.constant 0 : i32
    %c0_i32_1 = arith.constant 0 : i32
    return %c0_i32, %c0_i32_0 : i32, i32
  }
  func.func @transform_6(%arg0: i32) -> (i32, i32) {
    %c0_i32 = arith.constant 0 : i32
    %c0_i32_0 = arith.constant 0 : i32
    %c0_i32_1 = arith.constant 0 : i32
    return %c0_i32, %c0_i32_0 : i32, i32
  }
  func.func @transform_7(%arg0: i32) -> (i32, i32) {
    %c0_i32 = arith.constant 0 : i32
    %c0_i32_0 = arith.constant 0 : i32
    %c0_i32_1 = arith.constant 0 : i32
    return %c0_i32, %c0_i32_0 : i32, i32
  }
  func.func @transform_8(%arg0: i32) -> (i32, i32) {
    %c0_i32 = arith.constant 0 : i32
    %c0_i32_0 = arith.constant 0 : i32
    %c0_i32_1 = arith.constant 0 : i32
    return %c0_i32, %c0_i32_0 : i32, i32
  }
  func.func @transform_9(%arg0: i32) -> (i32, i32) {
    %c0_i32 = arith.constant 0 : i32
    %c0_i32_0 = arith.constant 0 : i32
    %c0_i32_1 = arith.constant 0 : i32
    return %c0_i32, %c0_i32_0 : i32, i32
  }
  func.func @transform_10(%arg0: i32) -> (i32, i32) {
    %c0_i32 = arith.constant 0 : i32
    %c0_i32_0 = arith.constant 0 : i32
    return %c0_i32, %arg0 : i32, i32
  }
}

</mosaic_0001>

<bundles_post_ra>
// kernel: hypergraph_synergy_forward.2
= control target key start
LH: loop header
LB: loop body
LE: loop exit
PB: predicated region body
PF: predicated region fallthrough
CT: control target
= control target key end

     0   :  { %s2286_s0 = inlined_call_operand.vmem [shape: bf16[16,8], index: 0, kind: input, shape index: {}]   ;;  %s2287_s1 = inlined_call_operand.vmem [shape: bf16[16,16], index: 1, kind: input, shape index: {}]   ;;  %s2288_s2 = inlined_call_operand.vmem [shape: bf16[4,16], index: 2, kind: input, shape index: {}]   ;;  %s2289_s3 = inlined_call_operand.vmem [shape: f32[4,1], index: 3, kind: input, shape index: {}]   ;;  %s2290_s4 = inlined_call_operand.vmem [shape: bf16[3,16], index: 4, kind: input, shape index: {}]   ;;  %s2291_s5 = inlined_call_operand.vmem [shape: bf16[7,4], index: 5, kind: input, shape index: {}]   ;;  %s2292_s6 = inlined_call_operand.vmem [shape: bf16[7,3], index: 6, kind: input, shape index: {}]   ;;  %s2293_s7 = inlined_call_operand.hbm [shape: f32[4,4], index: 7, kind: input, shape index: {}]   ;;  %s2294_s8 = inlined_call_operand.hbm [shape: f32[3,3], index: 8, kind: input, shape index: {}]   ;;  %s2295_s9 = inlined_call_operand.hbm [shape: bf16[8,128], index: 9, kind: input, shape index: {}]   ;;  %s2296_s10 = inlined_call_operand.hbm [shape: bf16[128,128], index: 10, kind: input, shape index: {}]   ;;  %s2297_s11 = inlined_call_operand.hbm [shape: bf16[128,128], index: 11, kind: input, shape index: {}]   ;;  %s2298_s12 = inlined_call_operand.hbm [shape: f32[1,128], index: 12, kind: input, shape index: {}]   ;;  %s2299_s13 = inlined_call_operand.hbm [shape: bf16[16,128], index: 13, kind: input, shape index: {}]   ;;  %s2300_s14 = inlined_call_operand.vmem [shape: f32[1,128], index: 14, kind: input, shape index: {}]   ;;  %s2301_s15 = inlined_call_operand.hbm [shape: bf16[128,128], index: 15, kind: input, shape index: {}]   ;;  %s2302_s16 = inlined_call_operand.vmem [shape: f32[1,128], index: 16, kind: input, shape index: {}]   ;;  %s2303_s17 = inlined_call_operand.vmem [shape: bf16[128,128], index: 17, kind: input, shape index: {}]   ;;  %s2304_s18 = inlined_call_operand.vmem [shape: bf16[128,128], index: 18, kind: input, shape index: {}]   ;;  %s2305_s19 = inlined_call_operand.vmem [shape: f32[7,128], index: 19, kind: output, shape index: {0}]   ;;  %s2306_s20 = inlined_call_operand.hbm [shape: f32[1,1], index: 20, kind: output, shape index: {1}]  }
   0x1   :  { %2307 = sst [smem:[#allocation23_spill]] %s2286_s0 }
   0x2   :  { %2308 = sst [smem:[#allocation24_spill]] %s2287_s1 }
   0x3   :  { %2309 = sst [smem:[#allocation25_spill]] %s2288_s2 }
   0x4   :  { %2310 = sst [smem:[#allocation26_spill]] %s2289_s3 }
   0x5   :  { %2311 = sst [smem:[#allocation27_spill]] %s2290_s4 }
   0x6   :  { %26 = vsyncpa [#allocation3], 0 }
   0x7   :  { %27 = vsyncpa [#allocation6], 0 }
   0x8   :  { %28 = vsyncpa [#allocation9], 0 }
   0x9   :  { %29 = vsyncpa [#allocation12], 0 }
   0xa   :  { %30 = vsyncpa [#allocation15], 0 }
   0xb   :  { %31 = vsyncpa [#allocation4], 0  ;;  %s1941_s1 = smov [#allocation5]   ;;  %s1942_s23 = smov [#allocation8]  }
   0xc   :  { %s62_s22 = sshll.u32 %s1941_s1, 4  ;;  %s81_s24 = sshll.u32 %s1942_s23, 4  ;;  %s63_s22 = int_to_ptr.vmem [resolvable:$true] %s62_s22  ;;  %s82_s24 = int_to_ptr.vmem [resolvable:$true] %s81_s24 }
   0xd   :  { %s1769_s2 = scalar_lea.vmem %s63_s22, 64  ;;  %p1774_p1 = scmp.lt.s32.totalorder %s63_s22, %s63_s22 }
   0xe   :  { %p1770_p0 = scmp.ne.s32.totalorder %s63_s22, %s1769_s2  ;;  %p1775_p2 = scmp.lt.s32.totalorder %s1769_s2, %s1769_s2 }
  0x10   :  { %p1776_p3 = por %p1775_p2, %p1774_p1 }
  0x12   :  { %p1777_p4 = pnand %p1776_p3, %p1770_p0 }
  0x14   :  { %1780 = shalt.err (!%p1777_p4)
}
  0x15   :  { %65 = dma.hbm_to_vmem [thread:$0]  %s2294_s8, 64, %s63_s22, [#allocation6]  }
  0x16   :  { %s1789_s26 = scalar_lea.vmem %s82_s24, 1024  ;;  %p1794_p6 = scmp.lt.s32.totalorder %s82_s24, %s82_s24 }
  0x17   :  { %p1790_p5 = scmp.ne.s32.totalorder %s82_s24, %s1789_s26  ;;  %p1795_p7 = scmp.lt.s32.totalorder %s1789_s26, %s1789_s26 }
  0x19   :  { %p1796_p8 = por %p1795_p7, %p1794_p6 }
  0x1b   :  { %p1797_p9 = pnand %p1796_p8, %p1790_p5 }
  0x1d   :  { %1800 = shalt.err (!%p1797_p9)
}
  0x1e   :  { %s1943_s27 = smov 64   ;;  %s1944_s28 = smov 4  }
  0x1f   :  { %87 = dma.hbm_to_vmem [thread:$0]  %s2296_s10, 1024, %s82_s24, [#allocation9], %s1943_s27, %s1943_s27, %s1944_s28  }
  0x20   :  { %s1945_s30 = smov [#allocation11]   ;;  %s1946_s21 = smov [#allocation2]  }
  0x21   :  { %s106_s0 = sshll.u32 %s1945_s30, 4  ;;  %s52_s8 = sshll.u32 %s1946_s21, 4  ;;  %s107_s0 = int_to_ptr.vmem [resolvable:$true] %s106_s0  ;;  %s53_s8 = int_to_ptr.vmem [resolvable:$true] %s52_s8 }
  0x22   :  { %s1809_s1 = scalar_lea.vmem %s107_s0, 16  ;;  %s1813_s22 = scalar_lea.vmem %s107_s0, 32 }
  0x23   :  { %p1810_p10 = scmp.ne.s32.totalorder %s107_s0, %s1809_s1  ;;  %p1814_p11 = scmp.lt.s32.totalorder %s107_s0, %s107_s0 }
  0x24   :  { %p1815_p12 = scmp.lt.s32.totalorder %s1813_s22, %s1809_s1 }
  0x26   :  { %p1816_p13 = por %p1815_p12, %p1814_p11 }
  0x28   :  { %p1817_p0 = pnand %p1816_p13, %p1810_p10 }
  0x2a   :  { %1820 = shalt.err (!%p1817_p0)
}
  0x2b   :  { %109 = dma.hbm_to_vmem [thread:$0]  %s2298_s12, 16, %s107_s0, [#allocation12]  }
  0x2c   :  { %s1829_s25 = scalar_lea.vmem %s53_s8, 64  ;;  %p1834_p2 = scmp.lt.s32.totalorder %s53_s8, %s53_s8 }
  0x2d   :  { %p1830_p1 = scmp.ne.s32.totalorder %s53_s8, %s1829_s25  ;;  %p1835_p3 = scmp.lt.s32.totalorder %s1829_s25, %s1829_s25 }
  0x2f   :  { %p1836_p4 = por %p1835_p3, %p1834_p2 }
  0x31   :  { %p1837_p5 = pnand %p1836_p4, %p1830_p1 }
  0x33   :  { %1840 = shalt.err (!%p1837_p5)
}
  0x34   :  { %55 = dma.hbm_to_vmem [thread:$0]  %s2293_s7, 64, %s53_s8, [#allocation3]  }
  0x35   :  { %s1947_s3 = smov [#allocation7]   ;;  %s1948_s4 = smov [#allocation10]  }
  0x36   :  { %s72_s26 = sshll.u32 %s1947_s3, 4  ;;  %s93_s29 = sshll.u32 %s1948_s4, 4  ;;  %s73_s26 = int_to_ptr.vmem [resolvable:$true] %s72_s26  ;;  %s94_s29 = int_to_ptr.vmem [resolvable:$true] %s93_s29 }
  0x37   :  { %s1849_s30 = scalar_lea.vmem %s73_s26, 64  ;;  %p1854_p7 = scmp.lt.s32.totalorder %s73_s26, %s73_s26 }
  0x38   :  { %p1850_p6 = scmp.ne.s32.totalorder %s73_s26, %s1849_s30  ;;  %p1855_p8 = scmp.lt.s32.totalorder %s1849_s30, %s1849_s30 }
  0x3a   :  { %p1856_p9 = por %p1855_p8, %p1854_p7 }
  0x3c   :  { %p1857_p10 = pnand %p1856_p9, %p1850_p6 }
  0x3e   :  { %1860 = shalt.err (!%p1857_p10)
}
  0x3f   :  { %75 = dma.hbm_to_vmem [thread:$0]  %s2295_s9, 64, %s73_s26, [#allocation6]  }
  0x40   :  { %s1869_s21 = scalar_lea.vmem %s94_s29, 1024  ;;  %p1874_p12 = scmp.lt.s32.totalorder %s94_s29, %s94_s29 }
  0x41   :  { %p1870_p11 = scmp.ne.s32.totalorder %s94_s29, %s1869_s21  ;;  %p1875_p13 = scmp.lt.s32.totalorder %s1869_s21, %s1869_s21 }
  0x43   :  { %p1876_p0 = por %p1875_p13, %p1874_p12 }
  0x45   :  { %p1877_p1 = pnand %p1876_p0, %p1870_p11 }
  0x47   :  { %1880 = shalt.err (!%p1877_p1)
}
  0x48   :  { %99 = dma.hbm_to_vmem [thread:$0]  %s2297_s11, 1024, %s94_s29, [#allocation9], %s1943_s27, %s1943_s27, %s1944_s28  }
  0x49   :  { %s1949_s1 = smov [#allocation13]   ;;  %s1950_s23 = smov [#allocation14]  }
  0x4a   :  { %s115_s22 = sshll.u32 %s1949_s1, 4  ;;  %s129_s2 = sshll.u32 %s1950_s23, 4  ;;  %s116_s22 = int_to_ptr.vmem [resolvable:$true] %s115_s22  ;;  %s130_s2 = int_to_ptr.vmem [resolvable:$true] %s129_s2 }
  0x4b   :  { %s1889_s9 = scalar_lea.vmem %s116_s22, 128  ;;  %p1894_p3 = scmp.lt.s32.totalorder %s116_s22, %s116_s22 }
  0x4c   :  { %p1890_p2 = scmp.ne.s32.totalorder %s116_s22, %s1889_s9  ;;  %p1895_p4 = scmp.lt.s32.totalorder %s1889_s9, %s1889_s9 }
  0x4e   :  { %p1896_p5 = por %p1895_p4, %p1894_p3 }
  0x50   :  { %p1897_p6 = pnand %p1896_p5, %p1890_p2 }
  0x52   :  { %1900 = shalt.err (!%p1897_p6)
}
  0x53   :  { %121 = dma.hbm_to_vmem [thread:$0]  %s2299_s13, 128, %s116_s22, [#allocation12], %s1943_s27, %s1943_s27, %s1944_s28  }
  0x54   :  { %s1909_s11 = scalar_lea.vmem %s130_s2, 1024  ;;  %p1914_p8 = scmp.lt.s32.totalorder %s130_s2, %s130_s2 }
  0x55   :  { %p1910_p7 = scmp.ne.s32.totalorder %s130_s2, %s1909_s11  ;;  %p1915_p9 = scmp.lt.s32.totalorder %s1909_s11, %s1909_s11 }
  0x57   :  { %p1916_p10 = por %p1915_p9, %p1914_p8 }
  0x59   :  { %p1917_p11 = pnand %p1916_p10, %p1910_p7 }
  0x5b   :  { %1920 = shalt.err (!%p1917_p11)
}
  0x5c   :  { %135 = dma.hbm_to_vmem [thread:$0]  %s2301_s15, 1024, %s130_s2, [#allocation15], %s1943_s27, %s1943_s27, %s1944_s28  }
  0x5d   :  { %1929 = dma.done.wait [#allocation3], 64  }
  0x5e   :  { %1930 = vsyncadd [#allocation3], 4294967232 }
  0x5f   :  { %1931 = dma.done.wait [#allocation6], 128  }
  0x60   :  { %1932 = vsyncadd [#allocation6], 4294967168 }
  0x61   :  { %1933 = dma.done.wait [#allocation9], 2048  }
  0x62   :  { %1934 = vsyncadd [#allocation9], 4294965248 }
  0x63   :  { %1935 = dma.done.wait [#allocation12], 144  }
  0x64   :  { %1936 = vsyncadd [#allocation12], 4294967152 }
  0x65   :  { %1937 = dma.done.wait [#allocation15], 1024  }
  0x66   :  { %1938 = vsyncadd [#allocation15], 4294966272  ;;  %v1951_v0 = vmov 0.0   ;;  %vm1952_vm0 = vmmov 0   ;;  %vm181_vm1 = vcmask 1043456   ;;  %vm177_vm2 = vcmask 64512  }
  0x67   :  { %1498 = vmatprep.subr.bf16.mxu0 %v1951_v0  ;;  %1500 = vmatprep.mubr.msk.bf16.mxu0 %vm1952_vm0, %v1951_v0  ;;  %v171_v1 = vld [vmem:[#allocation7] sm:$0xf]  ;;  %s2312_s27 = sld [smem:[#allocation23_spill]]  ;;  %v1707_v5 = vld [vmem:[#allocation8 + $0x30] sm:$0xff]   ;;  %v1708_v6 = vld [vmem:[#allocation8 + $0x28] sm:$0xff]   ;;  %vm232_vm3 = vcmask 130048  }
  0x68   :  { %1504 = vmatprep.subr.bf16.mxu1 %v1951_v0  ;;  %1506 = vmatprep.mubr.msk.bf16.mxu1 %vm1952_vm0, %v1951_v0  ;;  %v183_v2 = vsel %vm181_vm1, %v171_v1, 0  ;;  %v1706_v4 = vld [vmem:[#allocation8 + $0x38] sm:$0xff]   ;;  %v1709_v7 = vld [vmem:[#allocation8 + $0x20] sm:$0xff]   ;;  %v1711_v9 = vld [vmem:[#allocation8 + $0x10] sm:$0xff]   ;;  %s2313_s4 = sld [smem:[#allocation24_spill]]  ;;  %v1953_v35 = vmov 0  }
  0x69   :  { %1499 = vmatpush3.bf16.msra.mxu0 %v183_v2  ;;  %v1710_v8 = vld [vmem:[#allocation8 + $0x18] sm:$0xff]   ;;  %v1712_v16 = vld [vmem:[#allocation8 + $0x8] sm:$0xff]   ;;  %v1713_v17 = vld [vmem:[#allocation8] sm:$0xff]   ;;  %s2314_s12 = sld [smem:[#allocation27_spill]]  ;;  %1703 = vset.pattern.permute.xlu0 %v1953_v35  ;;  %vm921_vm4 = vcmask 1040384   ;;  %vm922_vm5 = vcmask 1041408  }
  0x6a   :  { %1510 = vmatprep.subr.bf16.mxu0 %v1951_v0  ;;  %v1714_v25 = vld [vmem:[#allocation13] sm:$0xff]   ;;  %s2315_s7 = sld [smem:[#allocation26_spill]]  ;;  %v1716_v36 = vld [vmem:[#allocation14 + $0x30] sm:$0xff]   ;;  %v1717_v39 = vld [vmem:[#allocation14 + $0x28] sm:$0xff]   ;;  %vm917_vm6 = vcmask 23552   ;;  %vm968_vm7 = vcmask 31744  }
  0x6b   :  { %v1715_v33 = vld [vmem:[#allocation14 + $0x38] sm:$0xff]   ;;  %v1390_v40 = vld [vmem:[%s2300_s14] ss:$0 sm:$0xff]  ;;  %v1718_v43 = vld [vmem:[#allocation14 + $0x20] sm:$0xff]   ;;  %s2316_s23 = sld [smem:[#allocation25_spill]]  ;;  %vm1313_vm8 = vcmask 27648  }
  0x6c   :  { %v1720_v44 = vld [vmem:[#allocation14 + $0x18] sm:$0xff]   ;;  %v1722_v45 = vld [vmem:[#allocation14 + $0x10] sm:$0xff]   ;;  %v1724_v46 = vld [vmem:[#allocation14 + $0x8] sm:$0xff]   ;;  %vm1328_vm9 = vcmask 18432  }
  0x6d   :  { %v1704_v3 = vld [vmem:[%s2312_s27] sm:$0xff]   ;;  %v1726_v48 = vld [vmem:[#allocation14] sm:$0xff]   ;;  %v1725_v61 = vld [vmem:[#allocation10 + $0x20] sm:$0xff]  }
  0x6e   :  { %1501 = vmatmul.mubr.msk.bf16.vlgmr.msra.gmra.mxu0 %vm177_vm2, %v1704_v3  ;;  %v1705_v15 = vld [vmem:[%s2313_s4] sm:$0xff]   ;;  %v1723_v60 = vld [vmem:[#allocation10 + $0x28] sm:$0xff]   ;;  %v1730_v2 = vld [vmem:[#allocation10] sm:$0xff]  }
  0x6f   :  { %1526 = vmatprep.mubr.msk.bf16.mxu0 %vm1952_vm0, %v1951_v0  ;;  %1511 = vmatpush3.bf16.msra.mxu0 %v1706_v4  ;;  %v594_v26 = vld [vmem:[%s2314_s12] sm:$0x3]  ;;  %v1719_v58 = vld [vmem:[#allocation10 + $0x38] sm:$0xff]   ;;  %v1729_v1 = vld [vmem:[#allocation10 + $0x8] sm:$0xff]   ;;  %s1955_s12 = smov [#allocation16]  }
  0x70   :  { %1512 = vmatprep.subr.bf16.mxu0 %v1951_v0  ;;  %v474_v32 = vld [vmem:[%s2315_s7] sm:$0xf]  ;;  %v1727_v62 = vld [vmem:[#allocation10 + $0x18] sm:$0xff]   ;;  %v1731_v3 = vld [vmem:[%s2303_s17 + $0x38] sm:$0xff]  }
  0x71   :  { %477 = vperm.xlu0 %1703, %v474_v32   ;;  %v429_v57 = vld [vmem:[%s2316_s23] sm:$0x3]  ;;  %v1732_v4 = vld [vmem:[%s2303_s17 + $0x30] sm:$0xff]  }
  0x72   :  { %v1721_v59 = vld [vmem:[#allocation10 + $0x30] sm:$0xff]  }
  0x73   :  { %1513 = vmatpush3.bf16.msra.mxu0 %v1707_v5  ;;  %v1728_v63 = vld [vmem:[#allocation10 + $0x10] sm:$0xff]   ;;  %v1733_v5 = vld [vmem:[%s2303_s17 + $0x28] sm:$0xff]  }
  0x74   :  { %1514 = vmatprep.subr.bf16.mxu0 %v1951_v0 }
  0x77   :  { %1515 = vmatpush3.bf16.msra.mxu0 %v1708_v6  ;;  %v1734_v6 = vld [vmem:[%s2303_s17 + $0x20] sm:$0xff]  }
  0x78   :  { %1516 = vmatprep.subr.bf16.mxu0 %v1951_v0 }
  0x7b   :  { %1517 = vmatpush3.bf16.msra.mxu0 %v1709_v7  ;;  %v1735_v7 = vld [vmem:[%s2303_s17 + $0x18] sm:$0xff]  }
  0x7c   :  { %1518 = vmatprep.subr.bf16.mxu0 %v1951_v0 }
  0x7f   :  { %1519 = vmatpush3.bf16.msra.mxu0 %v1710_v8  ;;  %v1736_v8 = vld [vmem:[%s2303_s17 + $0x10] sm:$0xff]  }
  0x80   :  { %1520 = vmatprep.subr.bf16.mxu0 %v1951_v0 }
  0x83   :  { %1521 = vmatpush3.bf16.msra.mxu0 %v1711_v9  ;;  %v1737_v9 = vld [vmem:[%s2303_s17 + $0x8] sm:$0xff]  }
  0x84   :  { %1522 = vmatprep.subr.bf16.mxu0 %v1951_v0 }
  0x87   :  { %1523 = vmatpush3.bf16.msra.mxu0 %v1712_v16 }
  0x88   :  { %1524 = vmatprep.subr.bf16.mxu0 %v1951_v0 }
  0x8b   :  { %1525 = vmatpush3.bf16.msra.mxu0 %v1713_v17 }
  0x8c   :  { %1562 = vmatprep.subr.bf16.mxu0 %v1951_v0 }
 0x12e   :  { %v219_v10 = vpop.f32.mrf.mxu0 }
 0x130   :  { %v1502_v11 = vpop.f32.mrf.mxu0 }
 0x131   :  { %v1738_v11 = vld [vmem:[%s2303_s17] sm:$0xff]  }
 0x132   :  { %v222_v12 = vpop.f32.mrf.mxu0 }
 0x133   :  { %v226_v13 = vpack.c.bf16 %v222_v12, %v219_v10  ;;  %v1393_v10 = vld [vmem:[%s2302_s16] ss:$0 sm:$0xff] }
 0x134   :  { %v1503_v14 = vpop.f32.mrf.mxu0 }
 0x135   :  { %1505 = vmatpush3.bf16.msra.mxu1 %v226_v13 }
 0x136   :  { %1530 = vmatprep.subr.bf16.mxu1 %v1951_v0 }
 0x138   :  { %1507 = vmatmul.mubr.msk.bf16.vlgmr.msra.gmra.mxu1 %vm232_vm3, %v1705_v15 }
 0x139   :  { %1532 = vmatprep.mubr.msk.bf16.mxu1 %vm1952_vm0, %v1951_v0 }
 0x1f8   :  { %v270_v18 = vpop.f32.mrf.mxu1 }
 0x1f9   :  { %v277_v21 = vmax.f32 %v270_v18, 0.0 }
 0x1fa   :  { %v1508_v19 = vpop.f32.mrf.mxu1 }
 0x1fb   :  { %v478_v19 = vpop.permute.xlu0 %477 }
 0x1fc   :  { %v273_v20 = vpop.f32.mrf.mxu1 }
 0x1fd   :  { %v278_v22 = vmax.f32 %v273_v20, 0.0 }
 0x1fe   :  { %v1509_v23 = vpop.f32.mrf.mxu1 }
 0x1ff   :  { %v295_v24 = vpack.c.bf16 %v278_v22, %v277_v21 }
 0x201   :  { %1527 = vmatmul.mubr.bf16.vlgmr.msra.gmra.mxu0 %v295_v24 }
 0x202   :  { %1564 = vmatprep.mubr.msk.bf16.mxu0 %vm1952_vm0, %v1951_v0  ;;  %1563 = vmatpush3.bf16.msra.mxu0 %v1714_v25 }
 0x203   :  { %1568 = vmatprep.subr.bf16.mxu0 %v1951_v0 }
 0x209   :  { %1565 = vmatmul.mubr.msk.bf16.vlgmr.msra.gmra.mxu0 %vm232_vm3, %v594_v26 }
 0x20a   :  { %1584 = vmatprep.mubr.msk.bf16.mxu0 %vm1952_vm0, %v1951_v0  ;;  %1569 = vmatpush3.bf16.msra.mxu0 %v1715_v33 }
 0x20b   :  { %1570 = vmatprep.subr.bf16.mxu0 %v1951_v0 }
 0x20e   :  { %1571 = vmatpush3.bf16.msra.mxu0 %v1716_v36 }
 0x20f   :  { %1572 = vmatprep.subr.bf16.mxu0 %v1951_v0 }
 0x212   :  { %1573 = vmatpush3.bf16.msra.mxu0 %v1717_v39 }
 0x213   :  { %1574 = vmatprep.subr.bf16.mxu0 %v1951_v0 }
 0x216   :  { %1575 = vmatpush3.bf16.msra.mxu0 %v1718_v43  ;;  %v874_v43 = vld [vmem:[%s2292_s6] sm:$0xf] }
 0x217   :  { %1576 = vmatprep.subr.bf16.mxu0 %v1951_v0 }
 0x21a   :  { %1577 = vmatpush3.bf16.msra.mxu0 %v1720_v44 }
 0x21b   :  { %1578 = vmatprep.subr.bf16.mxu0 %v1951_v0 }
 0x21e   :  { %1579 = vmatpush3.bf16.msra.mxu0 %v1722_v45 }
 0x21f   :  { %1580 = vmatprep.subr.bf16.mxu0 %v1951_v0 }
 0x222   :  { %1581 = vmatpush3.bf16.msra.mxu0 %v1724_v46 }
 0x223   :  { %1582 = vmatprep.subr.bf16.mxu0 %v1951_v0 }
 0x226   :  { %1583 = vmatpush3.bf16.msra.mxu0 %v1726_v48 }
 0x227   :  { %1608 = vmatprep.subr.bf16.mxu0 %v1951_v0 }
 0x2c1   :  { %v378_v27 = vpop.f32.mrf.mxu0 }
 0x2c3   :  { %v1528_v28 = vpop.f32.mrf.mxu0 }
 0x2c5   :  { %v381_v29 = vpop.f32.mrf.mxu0 }
 0x2c6   :  { %v385_v30 = vpack.c.bf16 %v381_v29, %v378_v27 }
 0x2c7   :  { %v1529_v31 = vpop.f32.mrf.mxu0 }
 0x2c8   :  { %1531 = vmatpush3.bf16.msra.mxu1 %v385_v30  ;;  %v1381_v30 = vld [vmem:[#allocation11] ss:$0 sm:$0xff]  ;;  %v1954_v31 = vmov 65535  }
 0x2c9   :  { %1536 = vmatprep.subr.bf16.mxu1 %v1951_v0  ;;  %v647_v34 = vpop.f32.mrf.mxu0  ;;  %v923_v32 = vsel %vm921_vm4, 4294967295, %v1954_v31 }
 0x2ca   :  { %v648_v42 = vadd.f32 %v1390_v40, %v647_v34  ;;  %v2216_v36 = vsel %vm922_vm5, %v923_v32, 0 }
 0x2cb   :  { %1533 = vmatmul.mubr.msk.bf16.vlgmr.msra.gmra.mxu1 %vm232_vm3, %v1705_v15  ;;  %v1566_v37 = vpop.f32.mrf.mxu0 }
 0x2cc   :  { %1538 = vmatprep.mubr.msk.bf16.mxu1 %vm1952_vm0, %v1951_v0  ;;  %1747 = vtanh.f32 %v648_v42 }
 0x2cd   :  { %v650_v38 = vpop.f32.mrf.mxu0 }
 0x2cf   :  { %v1567_v41 = vpop.f32.mrf.mxu0 }
 0x2d9   :  { %v1748_v47 = vpop.eup %1747 }
 0x2da   :  { %v670_v49 = vpack.c.bf16 %v1748_v47, %v1748_v47 }
 0x2dc   :  { %1585 = vmatmul.mubr.bf16.vlgmr.msra.gmra.mxu0 %v670_v49  ;;  %v783_v49 = vld [vmem:[%s2291_s5] sm:$0xf] }
 0x2dd   :  { %1624 = vmatprep.mubr.msk.bf16.mxu0 %vm1952_vm0, %v1951_v0  ;;  %1609 = vmatpush3.bf16.msra.mxu0 %v1731_v3 }
 0x2de   :  { %1610 = vmatprep.subr.bf16.mxu0 %v1951_v0 }
 0x2e1   :  { %1611 = vmatpush3.bf16.msra.mxu0 %v1732_v4 }
 0x2e2   :  { %1612 = vmatprep.subr.bf16.mxu0 %v1951_v0 }
 0x2e5   :  { %1613 = vmatpush3.bf16.msra.mxu0 %v1733_v5 }
 0x2e6   :  { %1614 = vmatprep.subr.bf16.mxu0 %v1951_v0 }
 0x2e9   :  { %1615 = vmatpush3.bf16.msra.mxu0 %v1734_v6 }
 0x2ea   :  { %1616 = vmatprep.subr.bf16.mxu0 %v1951_v0 }
 0x2ed   :  { %1617 = vmatpush3.bf16.msra.mxu0 %v1735_v7 }
 0x2ee   :  { %1618 = vmatprep.subr.bf16.mxu0 %v1951_v0 }
 0x2f1   :  { %1619 = vmatpush3.bf16.msra.mxu0 %v1736_v8 }
 0x2f2   :  { %1620 = vmatprep.subr.bf16.mxu0 %v1951_v0 }
 0x2f5   :  { %1621 = vmatpush3.bf16.msra.mxu0 %v1737_v9 }
 0x2f6   :  { %1622 = vmatprep.subr.bf16.mxu0 %v1951_v0 }
 0x2f9   :  { %1623 = vmatpush3.bf16.msra.mxu0 %v1738_v11 }
 0x2fa   :  { %1660 = vmatprep.subr.bf16.mxu0 %v1951_v0 }
 0x38b   :  { %v420_v50 = vpop.f32.mrf.mxu1 }
 0x38c   :  { %v427_v53 = vmax.f32 %v420_v50, 0.0  ;;  %v1739_v50 = vld [vmem:[%s2304_s18 + $0x38] sm:$0xff]  }
 0x38d   :  { %v1534_v51 = vpop.f32.mrf.mxu1 }
 0x38f   :  { %v423_v52 = vpop.f32.mrf.mxu1 }
 0x390   :  { %v428_v54 = vmax.f32 %v423_v52, 0.0 }
 0x391   :  { %v1535_v55 = vpop.f32.mrf.mxu1 }
 0x392   :  { %v430_v56 = vpack.c.bf16 %v428_v54, %v427_v53  ;;  %v1740_v53 = vld [vmem:[%s2304_s18 + $0x30] sm:$0xff]  }
 0x394   :  { %1537 = vmatpush3.bf16.msra.mxu1 %v430_v56  ;;  %v1741_v56 = vld [vmem:[%s2304_s18 + $0x28] sm:$0xff]  }
 0x395   :  { %1542 = vmatprep.subr.bf16.mxu1 %v1951_v0 }
 0x397   :  { %1539 = vmatmul.mubr.msk.bf16.vlgmr.msra.gmra.mxu1 %vm232_vm3, %v429_v57 }
 0x398   :  { %1543 = vmatpush3.bf16.msra.mxu1 %v1719_v58  ;;  %1558 = vmatprep.mubr.msk.bf16.mxu1 %vm1952_vm0, %v1951_v0  ;;  %v1742_v58 = vld [vmem:[%s2304_s18 + $0x20] sm:$0xff]  }
 0x399   :  { %1544 = vmatprep.subr.bf16.mxu1 %v1951_v0 }
 0x39c   :  { %1545 = vmatpush3.bf16.msra.mxu1 %v1721_v59  ;;  %v760_v12 = vpop.f32.mrf.mxu0  ;;  %v1743_v59 = vld [vmem:[%s2304_s18 + $0x18] sm:$0xff]  }
 0x39d   :  { %1546 = vmatprep.subr.bf16.mxu1 %v1951_v0  ;;  %v761_v13 = vadd.f32 %v1393_v10, %v760_v12 }
 0x39e   :  { %v1586_v14 = vpop.f32.mrf.mxu0 }
 0x39f   :  { %v766_v15 = vmax.f32 %v761_v13, 0.0 }
 0x3a0   :  { %1547 = vmatpush3.bf16.msra.mxu1 %v1723_v60  ;;  %v763_v16 = vpop.f32.mrf.mxu0  ;;  %v1744_v60 = vld [vmem:[%s2304_s18 + $0x10] sm:$0xff]  }
 0x3a1   :  { %1548 = vmatprep.subr.bf16.mxu1 %v1951_v0  ;;  %v875_v17 = vpack.c.bf16 %v766_v15, %v766_v15 }
 0x3a2   :  { %v1587_v18 = vpop.f32.mrf.mxu0 }
 0x3a3   :  { %1625 = vmatmul.mubr.bf16.vlgmr.msra.gmra.mxu0 %v875_v17 }
 0x3a4   :  { %1549 = vmatpush3.bf16.msra.mxu1 %v1725_v61  ;;  %1662 = vmatprep.mubr.msk.bf16.mxu0 %vm1952_vm0, %v1951_v0  ;;  %v1745_v61 = vld [vmem:[%s2304_s18 + $0x8] sm:$0xff]  }
 0x3a5   :  { %1550 = vmatprep.subr.bf16.mxu1 %v1951_v0 }
 0x3a8   :  { %1551 = vmatpush3.bf16.msra.mxu1 %v1727_v62  ;;  %v1746_v62 = vld [vmem:[%s2304_s18] sm:$0xff]  }
 0x3a9   :  { %1552 = vmatprep.subr.bf16.mxu1 %v1951_v0 }
 0x3ac   :  { %1553 = vmatpush3.bf16.msra.mxu1 %v1728_v63 }
 0x3ad   :  { %1554 = vmatprep.subr.bf16.mxu1 %v1951_v0 }
 0x3b0   :  { %1555 = vmatpush3.bf16.msra.mxu1 %v1729_v1 }
 0x3b1   :  { %1556 = vmatprep.subr.bf16.mxu1 %v1951_v0 }
 0x3b4   :  { %1557 = vmatpush3.bf16.msra.mxu1 %v1730_v2 }
 0x3b5   :  { %1588 = vmatprep.subr.bf16.mxu1 %v1951_v0 }
 0x457   :  { %v468_v20 = vpop.f32.mrf.mxu1 }
 0x458   :  { %v480_v21 = vmul.f32 %v478_v19, %v468_v20 }
 0x459   :  { %v1540_v22 = vpop.f32.mrf.mxu1 }
 0x45a   :  { %v497_v23 = vpack.c.bf16 %v480_v21, %v480_v21 }
 0x45b   :  { %v471_v24 = vpop.f32.mrf.mxu1 }
 0x45c   :  { %1559 = vmatmul.mubr.bf16.vlgmr.msra.gmra.mxu1 %v497_v23 }
 0x45d   :  { %v1541_v25 = vpop.f32.mrf.mxu1  ;;  %1589 = vmatpush3.bf16.msra.mxu1 %v1731_v3  ;;  %1604 = vmatprep.mubr.msk.bf16.mxu1 %vm1952_vm0, %v1951_v0 }
 0x45e   :  { %1590 = vmatprep.subr.bf16.mxu1 %v1951_v0 }
 0x461   :  { %1591 = vmatpush3.bf16.msra.mxu1 %v1732_v4 }
 0x462   :  { %1592 = vmatprep.subr.bf16.mxu1 %v1951_v0 }
 0x463   :  { %v910_v26 = vpop.f32.mrf.mxu0 }
 0x464   :  { %v916_v34 = vpack.c.bf16 %v910_v26, %v910_v26 }
 0x465   :  { %1593 = vmatpush3.bf16.msra.mxu1 %v1733_v5  ;;  %v1626_v27 = vpop.f32.mrf.mxu0 }
 0x466   :  { %1594 = vmatprep.subr.bf16.mxu1 %v1951_v0  ;;  %v926_v40 = vand.u32 %v2216_v36, %v916_v34 }
 0x467   :  { %v913_v28 = vpop.f32.mrf.mxu0 }
 0x469   :  { %1595 = vmatpush3.bf16.msra.mxu1 %v1734_v6  ;;  %v1627_v29 = vpop.f32.mrf.mxu0 }
 0x46a   :  { %1596 = vmatprep.subr.bf16.mxu1 %v1951_v0 }
 0x46d   :  { %1597 = vmatpush3.bf16.msra.mxu1 %v1735_v7 }
 0x46e   :  { %1598 = vmatprep.subr.bf16.mxu1 %v1951_v0 }
 0x471   :  { %1599 = vmatpush3.bf16.msra.mxu1 %v1736_v8 }
 0x472   :  { %1600 = vmatprep.subr.bf16.mxu1 %v1951_v0 }
 0x475   :  { %1601 = vmatpush3.bf16.msra.mxu1 %v1737_v9 }
 0x476   :  { %1602 = vmatprep.subr.bf16.mxu1 %v1951_v0 }
 0x479   :  { %1603 = vmatpush3.bf16.msra.mxu1 %v1738_v11 }
 0x47a   :  { %1628 = vmatprep.subr.bf16.mxu1 %v1951_v0 }
 0x51c   :  { %v587_v33 = vpop.f32.mrf.mxu1 }
 0x51d   :  { %v588_v35 = vadd.f32 %v1381_v30, %v587_v33 }
 0x51e   :  { %v1560_v37 = vpop.f32.mrf.mxu1 }
 0x51f   :  { %v593_v38 = vmax.f32 %v588_v35, 0.0 }
 0x520   :  { %v590_v39 = vpop.f32.mrf.mxu1 }
 0x521   :  { %v784_v41 = vpack.c.bf16 %v593_v38, %v593_v38 }
 0x522   :  { %v1561_v42 = vpop.f32.mrf.mxu1 }
 0x523   :  { %1605 = vmatmul.mubr.bf16.vlgmr.msra.gmra.mxu1 %v784_v41  ;;  %v1259_v42 = vld [vmem:[#allocation2] sm:$0xf] }
 0x524   :  { %1629 = vmatpush3.bf16.msra.mxu1 %v926_v40  ;;  %1630 = vmatprep.mubr.msk.bf16.mxu1 %vm1952_vm0, %v1951_v0 }
 0x525   :  { %1634 = vmatprep.subr.bf16.mxu1 %v1951_v0 }
 0x52b   :  { %1631 = vmatmul.mubr.msk.bf16.vlgmr.msra.gmra.mxu1 %vm917_vm6, %v874_v43 }
 0x52c   :  { %1636 = vmatprep.mubr.msk.bf16.mxu1 %vm1952_vm0, %v1951_v0 }
 0x5e3   :  { %v867_v44 = vpop.f32.mrf.mxu1 }
 0x5e4   :  { %v873_v45 = vpack.c.bf16 %v867_v44, %v867_v44 }
 0x5e5   :  { %v1606_v46 = vpop.f32.mrf.mxu1 }
 0x5e6   :  { %v973_v47 = vsel %vm922_vm5, %v873_v45, 0 }
 0x5e7   :  { %v870_v48 = vpop.f32.mrf.mxu1  ;;  %1635 = vmatpush3.bf16.msra.mxu1 %v973_v47  ;;  %v1310_v47 = vld [vmem:[#allocation5] sm:$0x7] }
 0x5e8   :  { %1640 = vmatprep.subr.bf16.mxu1 %v1951_v0 }
 0x5e9   :  { %v1607_v51 = vpop.f32.mrf.mxu1 }
 0x5ea   :  { %1637 = vmatmul.mubr.msk.bf16.vlgmr.msra.gmra.mxu1 %vm968_vm7, %v783_v49 }
 0x5eb   :  { %v962_v52 = vpop.f32.mrf.mxu1  ;;  %1641 = vmatpush3.bf16.msra.mxu1 %v1739_v50  ;;  %1656 = vmatprep.mubr.msk.bf16.mxu1 %vm1952_vm0, %v1951_v0 }
 0x5ec   :  { %1642 = vmatprep.subr.bf16.mxu1 %v1951_v0 }
 0x5ed   :  { %v1632_v54 = vpop.f32.mrf.mxu1 }
 0x5ef   :  { %v965_v55 = vpop.f32.mrf.mxu1  ;;  %1643 = vmatpush3.bf16.msra.mxu1 %v1740_v53 }
 0x5f0   :  { %1644 = vmatprep.subr.bf16.mxu1 %v1951_v0 }
 0x5f1   :  { %v1633_v57 = vpop.f32.mrf.mxu1 }
 0x5f3   :  { %1645 = vmatpush3.bf16.msra.mxu1 %v1741_v56 }
 0x5f4   :  { %1646 = vmatprep.subr.bf16.mxu1 %v1951_v0 }
 0x5f7   :  { %1647 = vmatpush3.bf16.msra.mxu1 %v1742_v58 }
 0x5f8   :  { %1648 = vmatprep.subr.bf16.mxu1 %v1951_v0 }
 0x5fb   :  { %1649 = vmatpush3.bf16.msra.mxu1 %v1743_v59 }
 0x5fc   :  { %1650 = vmatprep.subr.bf16.mxu1 %v1951_v0 }
 0x5ff   :  { %1651 = vmatpush3.bf16.msra.mxu1 %v1744_v60 }
 0x600   :  { %1652 = vmatprep.subr.bf16.mxu1 %v1951_v0 }
 0x603   :  { %1653 = vmatpush3.bf16.msra.mxu1 %v1745_v61 }
 0x604   :  { %1654 = vmatprep.subr.bf16.mxu1 %v1951_v0 }
 0x607   :  { %1655 = vmatpush3.bf16.msra.mxu1 %v1746_v62 }
 0x6aa   :  { %v1009_v63 = vpop.f32.mrf.mxu1 }
 0x6ab   :  { %v1010_v1 = vadd.f32 %v1009_v63, %v962_v52 }
 0x6ac   :  { %v1638_v2 = vpop.f32.mrf.mxu1 }
 0x6ad   :  { %1749 = vtanh.f32 %v1010_v1 }
 0x6ae   :  { %v1012_v3 = vpop.f32.mrf.mxu1 }
 0x6b0   :  { %v1639_v4 = vpop.f32.mrf.mxu1 }
 0x6ba   :  { %v1750_v5 = vpop.eup %1749 }
 0x6bb   :  { %v1032_v6 = vpack.c.bf16 %v1750_v5, %v1750_v5 }
 0x6bd   :  { %1657 = vmatmul.mubr.bf16.vlgmr.msra.gmra.mxu1 %v1032_v6 }
 0x77d   :  { %v1115_v7 = vpop.f32.mrf.mxu1 }
 0x77e   :  { %v1121_v8 = vpack.c.bf16 %v1115_v7, %v1115_v7 }
 0x77f   :  { %v1658_v9 = vpop.f32.mrf.mxu1 }
 0x780   :  { %v1123_v10 = vrot.slane %v1121_v8, 2  ;;  %v1168_v14 = vsel %vm922_vm5, %v1121_v8, 0 }
 0x781   :  { %v1118_v11 = vpop.f32.mrf.mxu1 }
 0x782   :  { %v1125_v12 = vand.u32 %v1123_v10, %v2216_v36 }
 0x783   :  { %v1659_v13 = vpop.f32.mrf.mxu1 }
 0x784   :  { %1661 = vmatpush3.bf16.msra.mxu0 %v1125_v12 }
 0x785   :  { %1666 = vmatprep.subr.bf16.mxu0 %v1951_v0 }
 0x787   :  { %1663 = vmatmul.mubr.msk.bf16.vlgmr.msra.gmra.mxu0 %vm917_vm6, %v874_v43 }
 0x788   :  { %1667 = vmatpush3.bf16.msra.mxu0 %v1168_v14  ;;  %1668 = vmatprep.mubr.msk.bf16.mxu0 %vm1952_vm0, %v1951_v0 }
 0x789   :  { %1672 = vmatprep.subr.bf16.mxu0 %v1951_v0 }
 0x78f   :  { %1669 = vmatmul.mubr.msk.bf16.vlgmr.msra.gmra.mxu0 %vm968_vm7, %v783_v49 }
 0x790   :  { %1674 = vmatprep.mubr.msk.bf16.mxu0 %vm1952_vm0, %v1951_v0 }
 0x847   :  { %v1161_v15 = vpop.f32.mrf.mxu0 }
 0x849   :  { %v1664_v16 = vpop.f32.mrf.mxu0 }
 0x84b   :  { %v1164_v17 = vpop.f32.mrf.mxu0 }
 0x84d   :  { %v1665_v18 = vpop.f32.mrf.mxu0 }
 0x84f   :  { %v1204_v19 = vpop.f32.mrf.mxu0 }
 0x850   :  { %v1205_v20 = vadd.f32 %v1204_v19, %v1161_v15 }
 0x851   :  { %v1670_v21 = vpop.f32.mrf.mxu0 }
 0x852   :  { %1751 = vtanh.f32 %v1205_v20 }
 0x853   :  { %v1207_v22 = vpop.f32.mrf.mxu0 }
 0x855   :  { %v1671_v23 = vpop.f32.mrf.mxu0 }
 0x85f   :  { %v1752_v24 = vpop.eup %1751 }
 0x860   :  { %1211 = vst [vmem:[%s2305_s19] sm:$0x7f] %v1752_v24  ;;  %v1212_v25 = vpack.c.bf16 %v1752_v24, %v1752_v24 }
 0x862   :  { %1673 = vmatpush3.bf16.xpose.msra.mxu0 %v1212_v25  ;;  %v1262_v26 = vrot.slane %v1212_v25, 2 }
 0x863   :  { %1678 = vmatprep.subr.bf16.mxu0 %v1951_v0 }
 0x869   :  { %1675 = vmatmul.mubr.bf16.vlgmr.msra.gmra.mxu0 %v1212_v25 }
 0x86a   :  { %1679 = vmatpush3.bf16.xpose.msra.mxu0 %v1262_v26  ;;  %1680 = vmatprep.mubr.msk.bf16.mxu0 %vm1952_vm0, %v1951_v0 }
 0x871   :  { %1681 = vmatmul.mubr.bf16.vlgmr.msra.gmra.mxu0 %v1262_v26 }
 0x929   :  { %v1247_v27 = vpop.f32.mrf.mxu0 }
 0x92a   :  { %v1253_v28 = vsub.f32 0.0, %v1247_v27 }
 0x92b   :  { %v1676_v29 = vpop.f32.mrf.mxu0 }
 0x92c   :  { %v1254_v30 = vmul.f32 1.442695, %v1253_v28 }
 0x92d   :  { %v1250_v31 = vpop.f32.mrf.mxu0 }
 0x92e   :  { %1753 = vpow2.f32 %v1254_v30 }
 0x92f   :  { %v1677_v32 = vpop.f32.mrf.mxu0 }
 0x931   :  { %v1298_v33 = vpop.f32.mrf.mxu0 }
 0x932   :  { %v1304_v34 = vsub.f32 0.0, %v1298_v33 }
 0x933   :  { %v1682_v35 = vpop.f32.mrf.mxu0 }
 0x934   :  { %v1305_v36 = vmul.f32 1.442695, %v1304_v34 }
 0x935   :  { %v1301_v37 = vpop.f32.mrf.mxu0 }
 0x936   :  { %1755 = vpow2.f32 %v1305_v36 }
 0x937   :  { %v1683_v38 = vpop.f32.mrf.mxu0 }
 0x93b   :  { %v1754_v39 = vpop.eup %1753 }
 0x93c   :  { %v1256_v40 = vadd.f32 1.0, %v1754_v39 }
 0x93e   :  { %1757 = vrcp.f32 %v1256_v40 }
 0x943   :  { %v1756_v41 = vpop.eup %1755 }
 0x944   :  { %v1307_v0 = vadd.f32 1.0, %v1756_v41 }
 0x946   :  { %1759 = vrcp.f32 %v1307_v0 }
 0x94b   :  { %v1758_v43 = vpop.eup %1757 }
 0x94c   :  { %v1260_v44 = vsub.f32 %v1758_v43, %v1259_v42 }
 0x94e   :  { %v1312_v45 = vmul.f32 %v1260_v44, %v1260_v44 }
 0x950   :  { %v1314_v46 = vsel %vm1313_vm8, %v1312_v45, 0.0 }
 0x951   :  { %1315 = vadd.xlane.f32.xlu0 %v1314_v46 }
 0x953   :  { %v1760_v48 = vpop.eup %1759 }
 0x954   :  { %v1311_v49 = vsub.f32 %v1760_v48, %v1310_v47 }
 0x956   :  { %v1327_v50 = vmul.f32 %v1311_v49, %v1311_v49 }
 0x958   :  { %v1329_v51 = vsel %vm1328_vm9, %v1327_v50, 0.0 }
 0x959   :  { %1330 = vadd.xlane.f32.xlu1 %v1329_v51 }
 0x9da   :  { %v1316_v52 = vpop.xlane.xlu0 %1315 }
 0x9db   :  { %v1317_v53 = vrot.slane %v1316_v52, 4 }
 0x9dd   :  { %v1318_v54 = vadd.f32 %v1317_v53, %v1316_v52 }
 0x9df   :  { %v1319_v55 = vrot.slane %v1318_v54, 2 }
 0x9e1   :  { %v1320_v56 = vadd.f32 %v1319_v55, %v1318_v54 }
 0x9e2   :  { %v1331_v57 = vpop.xlane.xlu1 %1330 }
 0x9e3   :  { %v1332_v58 = vrot.slane %v1331_v57, 4  ;;  %v1321_v59 = vrot.slane %v1320_v56, 1 }
 0x9e5   :  { %v1333_v60 = vadd.f32 %v1332_v58, %v1331_v57  ;;  %v1322_v61 = vadd.f32 %v1321_v59, %v1320_v56 }
 0x9e7   :  { %v1334_v62 = vrot.slane %v1333_v60, 2  ;;  %1684 = vpush %v1322_v61 }
 0x9e9   :  { %v1335_v63 = vadd.f32 %v1334_v62, %v1333_v60 }
 0x9eb   :  { %v1336_v1 = vrot.slane %v1335_v63, 1 }
 0x9ed   :  { %v1337_v2 = vadd.f32 %v1336_v1, %v1335_v63 }
 0x9ef   :  { %1686 = vpush %v1337_v2 }
 0xa18   :  { %s1685_s19 = spop %1684 }
 0xa19   :  { %s1326_s26 = smul.f32 0.0625, %s1685_s19 }
 0xa20   :  { %s1687_s4 = spop %1686 }
 0xa21   :  { %s1341_s29 = smul.f32 0.11111111, %s1687_s4 }
 0xa23   :  { %s1342_s30 = sadd.f32 %s1341_s29, %s1326_s26 }
 0xa25   :  { %1344 = sst [smem:[#allocation16]] %s1342_s30 }
 0xa26   :  { %1354 = dma.smem_to_hbm %s1955_s12, 16, %s2306_s20, [#allocation4]  }
 0xa27   :  { %1939 = dma.done.wait [#allocation4], 16  }
 0xa28   :  { %1940 = vsyncadd [#allocation4], 4294967280 }
 0xa29   :  { %1360 = sfence }
 0xa2a   :  { %1361 = vsyncpa [#allocation3], 1 }
 0xa2b   :  { %1362 = vsyncpa [#allocation6], 1 }
 0xa2c   :  { %1363 = vsyncpa [#allocation9], 1 }
 0xa2d   :  { %1364 = vsyncpa [#allocation12], 1 }
 0xa2e   :  { %1365 = vsyncpa [#allocation15], 1 }
 0xa2f   :  { %1366 = vsyncpa [#allocation4], 1 }

// kernel: hypergraph_synergy_forward.3
= control target key start
LH: loop header
LB: loop body
LE: loop exit
PB: predicated region body
PF: predicated region fallthrough
CT: control target
= control target key end

     0   :  { %v1780_v0 = vmov 0   ;;  %vm185_vm0 = vcmask 1042432   ;;  %vm186_vm1 = vcmask 1043456   ;;  %v1781_v9 = vmov 65535   ;;  %s2257_s1 = inlined_call_operand.vmem [shape: s32[128,1], index: 1, kind: input, shape index: {}]   ;;  %s2258_s3 = inlined_call_operand.vmem [shape: bf16[7,128], index: 3, kind: input, shape index: {}]   ;;  %s2259_s0 = inlined_call_operand.vmem [shape: s32[128,1], index: 0, kind: input, shape index: {}]   ;;  %s2260_s2 = inlined_call_operand.vmem [shape: s32[128,1], index: 2, kind: input, shape index: {}]   ;;  %s2261_s5 = inlined_call_operand.vmem [shape: bf16[128,128], index: 5, kind: input, shape index: {}]   ;;  %s2262_s4 = inlined_call_operand.vmem [shape: bf16[128,128], index: 4, kind: input, shape index: {}]   ;;  %s2263_s6 = inlined_call_operand.vmem [shape: bf16[128,128], index: 6, kind: input, shape index: {}]   ;;  %s2264_s7 = inlined_call_operand.vmem [shape: f32[1,128], index: 7, kind: input, shape index: {}]   ;;  %s2265_s8 = inlined_call_operand.vmem [shape: bf16[1,128], index: 8, kind: input, shape index: {}]   ;;  %s2266_s9 = inlined_call_operand.<no memory space> [shape: f32[1,1], index: 9, kind: input, shape index: {}]   ;;  %s2267_s10 = inlined_call_operand.vmem [shape: f32[1,128], index: 10, kind: output, shape index: {}]  }
   0x1   :  { %1751 = vset.pattern.permute.xlu1 %v1780_v0  ;;  %1750 = vset.pattern.permute.xlu0 %v1780_v0  ;;  %v315_v1 = vld [vmem:[%s2257_s1 + $0x10] sm:$0xff]  ;;  %v313_v2 = vld [vmem:[%s2257_s1] sm:$0xff]  ;;  %v316_v3 = vld [vmem:[%s2257_s1 + $0x18] sm:$0xff]  ;;  %v187_v10 = vsel %vm185_vm0, 4294967295, %v1781_v9  ;;  %v37_v55 = vlaneseq  ;;  %vm160_vm6 = vcmask 56320   ;;  %v1782_v61 = vmov 0.0  }
   0x2   :  { %336 = vperm.xlu1 %1751, %v315_v1   ;;  %330 = vperm.xlu0 %1750, %v313_v2   ;;  %v314_v4 = vld [vmem:[%s2257_s1 + $0x8] sm:$0xff]  ;;  %v317_v6 = vld [vmem:[%s2257_s1 + $0x20] sm:$0xff]  ;;  %v320_v7 = vld [vmem:[%s2257_s1 + $0x38] sm:$0xff]  ;;  %v188_v13 = vsel %vm186_vm1, %v187_v10, 0 }
   0x3   :  { %v318_v5 = vld [vmem:[%s2257_s1 + $0x28] sm:$0xff]  ;;  %v319_v8 = vld [vmem:[%s2257_s1 + $0x30] sm:$0xff]  ;;  %v321_v12 = vld [vmem:[%s2257_s1 + $0x40] sm:$0xff]  ;;  %v1996_v56 = vand.u32 127, %v37_v55 }
   0x4   :  { %v322_v11 = vld [vmem:[%s2257_s1 + $0x48] sm:$0xff]  ;;  %v39_v14 = vld [vmem:[%s2258_s3] sm:$0xf]  ;;  %v324_v16 = vld [vmem:[%s2257_s1 + $0x58] sm:$0xff] }
   0x5   :  { %v1872_v15 = vand.u32 %v188_v13, %v39_v14  ;;  %v323_v17 = vld [vmem:[%s2257_s1 + $0x50] sm:$0xff]  ;;  %v326_v18 = vld [vmem:[%s2257_s1 + $0x68] sm:$0xff]  ;;  %v325_v19 = vld [vmem:[%s2257_s1 + $0x60] sm:$0xff] }
   0x6   :  { %339 = vperm.xlu1 %1751, %v316_v3   ;;  %333 = vperm.xlu0 %1750, %v314_v4   ;;  %v328_v20 = vld [vmem:[%s2257_s1 + $0x78] sm:$0xff]  ;;  %v327_v21 = vld [vmem:[%s2257_s1 + $0x70] sm:$0xff]  ;;  %v41_v22 = vld [vmem:[%s2259_s0 + $0x8] sm:$0xff] }
   0x7   :  { %1594 = vmatprep.subr.bf16.mxu1 %v1872_v15  ;;  %1576 = vmatprep.subr.bf16.mxu0 %v1872_v15  ;;  %v40_v23 = vld [vmem:[%s2259_s0] sm:$0xff]  ;;  %v43_v24 = vld [vmem:[%s2259_s0 + $0x18] sm:$0xff]  ;;  %v42_v25 = vld [vmem:[%s2259_s0 + $0x10] sm:$0xff] }
   0x8   :  { %1595 = vmatpush3.bf16.msra.mxu1 %v1872_v15  ;;  %1577 = vmatpush3.bf16.msra.mxu0 %v1872_v15  ;;  %v45_v26 = vld [vmem:[%s2259_s0 + $0x28] sm:$0xff]  ;;  %v44_v27 = vld [vmem:[%s2259_s0 + $0x20] sm:$0xff]  ;;  %v47_v28 = vld [vmem:[%s2259_s0 + $0x38] sm:$0xff] }
   0x9   :  { %1676 = vmatprep.subr.bf16.mxu0 %v1872_v15  ;;  %v46_v29 = vld [vmem:[%s2259_s0 + $0x30] sm:$0xff]  ;;  %v49_v30 = vld [vmem:[%s2259_s0 + $0x48] sm:$0xff]  ;;  %v48_v31 = vld [vmem:[%s2259_s0 + $0x40] sm:$0xff] }
   0xa   :  { %345 = vperm.xlu1 %1751, %v318_v5   ;;  %342 = vperm.xlu0 %1750, %v317_v6   ;;  %v51_v32 = vld [vmem:[%s2259_s0 + $0x58] sm:$0xff]  ;;  %v50_v33 = vld [vmem:[%s2259_s0 + $0x50] sm:$0xff]  ;;  %v53_v34 = vld [vmem:[%s2259_s0 + $0x68] sm:$0xff] }
   0xb   :  { %v52_v35 = vld [vmem:[%s2259_s0 + $0x60] sm:$0xff]  ;;  %v55_v36 = vld [vmem:[%s2259_s0 + $0x78] sm:$0xff]  ;;  %v54_v37 = vld [vmem:[%s2259_s0 + $0x70] sm:$0xff] }
   0xc   :  { %v869_v38 = vld [vmem:[%s2260_s2 + $0x8] sm:$0xff]  ;;  %v868_v39 = vld [vmem:[%s2260_s2] sm:$0xff]  ;;  %v871_v40 = vld [vmem:[%s2260_s2 + $0x18] sm:$0xff] }
   0xd   :  { %v870_v41 = vld [vmem:[%s2260_s2 + $0x10] sm:$0xff]  ;;  %v873_v42 = vld [vmem:[%s2260_s2 + $0x28] sm:$0xff]  ;;  %v872_v43 = vld [vmem:[%s2260_s2 + $0x20] sm:$0xff] }
   0xe   :  { %351 = vperm.xlu1 %1751, %v320_v7   ;;  %348 = vperm.xlu0 %1750, %v319_v8   ;;  %v875_v44 = vld [vmem:[%s2260_s2 + $0x38] sm:$0xff]  ;;  %v874_v45 = vld [vmem:[%s2260_s2 + $0x30] sm:$0xff]  ;;  %v877_v46 = vld [vmem:[%s2260_s2 + $0x48] sm:$0xff] }
   0xf   :  { %v876_v47 = vld [vmem:[%s2260_s2 + $0x40] sm:$0xff]  ;;  %v879_v48 = vld [vmem:[%s2260_s2 + $0x58] sm:$0xff]  ;;  %v878_v49 = vld [vmem:[%s2260_s2 + $0x50] sm:$0xff] }
  0x10   :  { %v881_v50 = vld [vmem:[%s2260_s2 + $0x68] sm:$0xff]  ;;  %v880_v51 = vld [vmem:[%s2260_s2 + $0x60] sm:$0xff]  ;;  %v883_v52 = vld [vmem:[%s2260_s2 + $0x78] sm:$0xff] }
  0x11   :  { %v882_v53 = vld [vmem:[%s2260_s2 + $0x70] sm:$0xff]  ;;  %v1752_v54 = vld [vmem:[%s2261_s5 + $0x38] sm:$0xff]  }
  0x12   :  { %357 = vperm.xlu1 %1751, %v322_v11   ;;  %354 = vperm.xlu0 %1750, %v321_v12   ;;  %v1753_v6 = vld [vmem:[%s2261_s5 + $0x30] sm:$0xff]   ;;  %v1754_v12 = vld [vmem:[%s2261_s5 + $0x28] sm:$0xff]  }
  0x13   :  { %1612 = vmatprep.subr.bf16.mxu1 %v1752_v54 }
  0x16   :  { %363 = vperm.xlu1 %1751, %v324_v16   ;;  %360 = vperm.xlu0 %1750, %v323_v17  }
  0x1a   :  { %369 = vperm.xlu1 %1751, %v326_v18   ;;  %366 = vperm.xlu0 %1750, %v325_v19   ;;  %v1755_v19 = vld [vmem:[%s2261_s5 + $0x20] sm:$0xff]  }
  0x1e   :  { %375 = vperm.xlu1 %1751, %v328_v20   ;;  %372 = vperm.xlu0 %1750, %v327_v21  }
  0x22   :  { %60 = vperm.xlu1 %1751, %v41_v22   ;;  %57 = vperm.xlu0 %1750, %v40_v23  }
  0x26   :  { %66 = vperm.xlu1 %1751, %v43_v24   ;;  %63 = vperm.xlu0 %1750, %v42_v25   ;;  %v1756_v25 = vld [vmem:[%s2261_s5 + $0x18] sm:$0xff]  }
  0x2a   :  { %72 = vperm.xlu1 %1751, %v45_v26   ;;  %69 = vperm.xlu0 %1750, %v44_v27  }
  0x2e   :  { %78 = vperm.xlu1 %1751, %v47_v28   ;;  %75 = vperm.xlu0 %1750, %v46_v29  }
  0x32   :  { %84 = vperm.xlu1 %1751, %v49_v30   ;;  %81 = vperm.xlu0 %1750, %v48_v31   ;;  %v1757_v31 = vld [vmem:[%s2261_s5 + $0x10] sm:$0xff]  }
  0x36   :  { %90 = vperm.xlu1 %1751, %v51_v32   ;;  %87 = vperm.xlu0 %1750, %v50_v33  }
  0x3a   :  { %96 = vperm.xlu1 %1751, %v53_v34   ;;  %93 = vperm.xlu0 %1750, %v52_v35  }
  0x3e   :  { %102 = vperm.xlu1 %1751, %v55_v36   ;;  %99 = vperm.xlu0 %1750, %v54_v37  }
  0x42   :  { %888 = vperm.xlu1 %1751, %v869_v38   ;;  %885 = vperm.xlu0 %1750, %v868_v39  }
  0x46   :  { %894 = vperm.xlu1 %1751, %v871_v40   ;;  %891 = vperm.xlu0 %1750, %v870_v41  }
  0x4a   :  { %900 = vperm.xlu1 %1751, %v873_v42   ;;  %897 = vperm.xlu0 %1750, %v872_v43  }
  0x4e   :  { %906 = vperm.xlu1 %1751, %v875_v44   ;;  %903 = vperm.xlu0 %1750, %v874_v45  }
  0x52   :  { %912 = vperm.xlu1 %1751, %v877_v46   ;;  %909 = vperm.xlu0 %1750, %v876_v47  }
  0x56   :  { %918 = vperm.xlu1 %1751, %v879_v48   ;;  %915 = vperm.xlu0 %1750, %v878_v49  }
  0x5a   :  { %924 = vperm.xlu1 %1751, %v881_v50   ;;  %921 = vperm.xlu0 %1750, %v880_v51  }
  0x5e   :  { %930 = vperm.xlu1 %1751, %v883_v52   ;;  %927 = vperm.xlu0 %1750, %v882_v53  }
  0x7d   :  { %v337_v57 = vpop.permute.xlu1 %336  ;;  %v331_v58 = vpop.permute.xlu0 %330 }
  0x7e   :  { %vm379_vm2 = vcmp.eq.s32.totalorder %v337_v57, %v1996_v56  ;;  %vm377_vm3 = vcmp.eq.s32.totalorder %v331_v58, %v1996_v56 }
  0x7f   :  { %v1421_v62 = vsel %vm379_vm2, 1.0, %v1782_v61  ;;  %v1419_v63 = vsel %vm377_vm3, 1.0, %v1782_v61 }
  0x81   :  { %v340_v59 = vpop.permute.xlu1 %339  ;;  %v334_v60 = vpop.permute.xlu0 %333 }
  0x82   :  { %vm380_vm4 = vcmp.eq.s32.totalorder %v340_v59, %v1996_v56  ;;  %vm378_vm5 = vcmp.eq.s32.totalorder %v334_v60, %v1996_v56 }
  0x83   :  { %v1422_v0 = vsel %vm380_vm4, 1.0, %v1782_v61  ;;  %v1420_v1 = vsel %vm378_vm5, 1.0, %v1782_v61 }
  0x84   :  { %v426_v2 = vpack.c.bf16 %v1422_v0, %v1421_v62  ;;  %v425_v3 = vpack.c.bf16 %v1420_v1, %v1419_v63 }
  0x85   :  { %v346_v4 = vpop.permute.xlu1 %345  ;;  %v343_v5 = vpop.permute.xlu0 %342 }
  0x86   :  { %vm382_vm7 = vcmp.eq.s32.totalorder %v346_v4, %v1996_v56  ;;  %vm381_vm8 = vcmp.eq.s32.totalorder %v343_v5, %v1996_v56  ;;  %1596 = vmatprep.mubr.msk.bf16.mxu1 %vm160_vm6, %v425_v3 }
  0x87   :  { %v1424_v7 = vsel %vm382_vm7, 1.0, %v1782_v61  ;;  %v1423_v8 = vsel %vm381_vm8, 1.0, %v1782_v61  ;;  %1597 = vmatmul.mubr.msk.bf16.vlgmr.msra.gmra.mxu1 %vm160_vm6, %v426_v2 }
  0x88   :  { %v427_v9 = vpack.c.bf16 %v1424_v7, %v1423_v8  ;;  %1613 = vmatpush3.bf16.msra.mxu1 %v1752_v54 }
  0x89   :  { %v352_v10 = vpop.permute.xlu1 %351  ;;  %v349_v11 = vpop.permute.xlu0 %348  ;;  %1614 = vmatprep.subr.bf16.mxu1 %v1753_v6 }
  0x8a   :  { %vm384_vm9 = vcmp.eq.s32.totalorder %v352_v10, %v1996_v56  ;;  %vm383_vm10 = vcmp.eq.s32.totalorder %v349_v11, %v1996_v56  ;;  %1600 = vmatprep.mubr.msk.bf16.mxu1 %vm160_vm6, %v427_v9 }
  0x8b   :  { %v1426_v13 = vsel %vm384_vm9, 1.0, %v1782_v61  ;;  %v1425_v14 = vsel %vm383_vm10, 1.0, %v1782_v61 }
  0x8c   :  { %v428_v16 = vpack.c.bf16 %v1426_v13, %v1425_v14  ;;  %1615 = vmatpush3.bf16.msra.mxu1 %v1753_v6 }
  0x8d   :  { %v358_v17 = vpop.permute.xlu1 %357  ;;  %v355_v18 = vpop.permute.xlu0 %354  ;;  %1616 = vmatprep.subr.bf16.mxu1 %v1754_v12 }
  0x8e   :  { %vm386_vm11 = vcmp.eq.s32.totalorder %v358_v17, %v1996_v56  ;;  %vm385_vm12 = vcmp.eq.s32.totalorder %v355_v18, %v1996_v56 }
  0x8f   :  { %v1428_v20 = vsel %vm386_vm11, 1.0, %v1782_v61  ;;  %v1427_v21 = vsel %vm385_vm12, 1.0, %v1782_v61  ;;  %1601 = vmatmul.mubr.msk.bf16.gmra.mxu1 %vm160_vm6, %v428_v16 }
  0x90   :  { %v429_v22 = vpack.c.bf16 %v1428_v20, %v1427_v21  ;;  %1617 = vmatpush3.bf16.msra.mxu1 %v1754_v12 }
  0x91   :  { %v364_v23 = vpop.permute.xlu1 %363  ;;  %v361_v24 = vpop.permute.xlu0 %360  ;;  %1618 = vmatprep.subr.bf16.mxu1 %v1755_v19 }
  0x92   :  { %vm388_vm13 = vcmp.eq.s32.totalorder %v364_v23, %v1996_v56  ;;  %vm387_vm14 = vcmp.eq.s32.totalorder %v361_v24, %v1996_v56  ;;  %1604 = vmatprep.mubr.msk.bf16.mxu1 %vm160_vm6, %v429_v22 }
  0x93   :  { %v1430_v26 = vsel %vm388_vm13, 1.0, %v1782_v61  ;;  %v1429_v27 = vsel %vm387_vm14, 1.0, %v1782_v61 }
  0x94   :  { %v430_v28 = vpack.c.bf16 %v1430_v26, %v1429_v27  ;;  %1619 = vmatpush3.bf16.msra.mxu1 %v1755_v19 }
  0x95   :  { %v370_v29 = vpop.permute.xlu1 %369  ;;  %v367_v30 = vpop.permute.xlu0 %366  ;;  %1620 = vmatprep.subr.bf16.mxu1 %v1756_v25 }
  0x96   :  { %vm390_vm15 = vcmp.eq.s32.totalorder %v370_v29, %v1996_v56  ;;  %vm389_vm0 = vcmp.eq.s32.totalorder %v367_v30, %v1996_v56 }
  0x97   :  { %v1432_v32 = vsel %vm390_vm15, 1.0, %v1782_v61  ;;  %v1431_v33 = vsel %vm389_vm0, 1.0, %v1782_v61  ;;  %1605 = vmatmul.mubr.msk.bf16.gmra.mxu1 %vm160_vm6, %v430_v28 }
  0x98   :  { %v431_v34 = vpack.c.bf16 %v1432_v32, %v1431_v33  ;;  %1621 = vmatpush3.bf16.msra.mxu1 %v1756_v25  ;;  %v1758_v32 = vld [vmem:[%s2261_s5 + $0x8] sm:$0xff]  }
  0x99   :  { %v376_v35 = vpop.permute.xlu1 %375  ;;  %v373_v36 = vpop.permute.xlu0 %372  ;;  %1622 = vmatprep.subr.bf16.mxu1 %v1757_v31 }
  0x9a   :  { %vm392_vm1 = vcmp.eq.s32.totalorder %v376_v35, %v1996_v56  ;;  %vm391_vm2 = vcmp.eq.s32.totalorder %v373_v36, %v1996_v56  ;;  %1608 = vmatprep.mubr.msk.bf16.mxu1 %vm160_vm6, %v431_v34 }
  0x9b   :  { %v1434_v37 = vsel %vm392_vm1, 1.0, %v1782_v61  ;;  %v1433_v38 = vsel %vm391_vm2, 1.0, %v1782_v61 }
  0x9c   :  { %v432_v39 = vpack.c.bf16 %v1434_v37, %v1433_v38  ;;  %1623 = vmatpush3.bf16.msra.mxu1 %v1757_v31  ;;  %v1759_v38 = vld [vmem:[%s2261_s5] sm:$0xff]  }
  0x9d   :  { %v61_v40 = vpop.permute.xlu1 %60  ;;  %v58_v41 = vpop.permute.xlu0 %57  ;;  %1624 = vmatprep.subr.bf16.mxu1 %v1758_v32 }
  0x9e   :  { %vm105_vm3 = vcmp.eq.s32.totalorder %v61_v40, %v1996_v56  ;;  %vm104_vm4 = vcmp.eq.s32.totalorder %v58_v41, %v1996_v56 }
  0x9f   :  { %v1396_v42 = vsel %vm105_vm3, 1.0, %v1782_v61  ;;  %v1395_v43 = vsel %vm104_vm4, 1.0, %v1782_v61  ;;  %1609 = vmatmul.mubr.msk.bf16.gmra.mxu1 %vm160_vm6, %v432_v39 }
  0xa0   :  { %v152_v44 = vpack.c.bf16 %v1396_v42, %v1395_v43  ;;  %1625 = vmatpush3.bf16.msra.mxu1 %v1758_v32  ;;  %v1768_v32 = vld [vmem:[%s2263_s6 + $0x38] sm:$0xff]  }
  0xa1   :  { %v67_v45 = vpop.permute.xlu1 %66  ;;  %v64_v46 = vpop.permute.xlu0 %63  ;;  %1626 = vmatprep.subr.bf16.mxu1 %v1759_v38 }
  0xa2   :  { %vm107_vm5 = vcmp.eq.s32.totalorder %v67_v45, %v1996_v56  ;;  %vm106_vm7 = vcmp.eq.s32.totalorder %v64_v46, %v1996_v56  ;;  %1578 = vmatprep.mubr.msk.bf16.mxu0 %vm160_vm6, %v152_v44  ;;  %v1760_v45 = vld [vmem:[%s2262_s4 + $0x38] sm:$0xff]  }
  0xa3   :  { %v1398_v47 = vsel %vm107_vm5, 1.0, %v1782_v61  ;;  %v1397_v48 = vsel %vm106_vm7, 1.0, %v1782_v61 }
  0xa4   :  { %v153_v49 = vpack.c.bf16 %v1398_v47, %v1397_v48  ;;  %1627 = vmatpush3.bf16.msra.mxu1 %v1759_v38 }
  0xa5   :  { %v73_v50 = vpop.permute.xlu1 %72  ;;  %v70_v51 = vpop.permute.xlu0 %69  ;;  %1644 = vmatprep.subr.bf16.mxu1 %v1760_v45 }
  0xa6   :  { %vm109_vm8 = vcmp.eq.s32.totalorder %v73_v50, %v1996_v56  ;;  %vm108_vm9 = vcmp.eq.s32.totalorder %v70_v51, %v1996_v56  ;;  %1579 = vmatmul.mubr.msk.bf16.vlgmr.msra.gmra.mxu0 %vm160_vm6, %v153_v49 }
  0xa7   :  { %v1400_v52 = vsel %vm109_vm8, 1.0, %v1782_v61  ;;  %v1399_v53 = vsel %vm108_vm9, 1.0, %v1782_v61  ;;  %1677 = vmatpush3.bf16.msra.mxu0 %v1872_v15 }
  0xa8   :  { %v154_v54 = vpack.c.bf16 %v1400_v52, %v1399_v53  ;;  %1726 = vmatprep.subr.bf16.mxu0 %v1782_v61 }
  0xa9   :  { %v79_v55 = vpop.permute.xlu1 %78  ;;  %v76_v57 = vpop.permute.xlu0 %75 }
  0xaa   :  { %vm111_vm10 = vcmp.eq.s32.totalorder %v79_v55, %v1996_v56  ;;  %vm110_vm11 = vcmp.eq.s32.totalorder %v76_v57, %v1996_v56  ;;  %1582 = vmatprep.mubr.msk.bf16.mxu0 %vm160_vm6, %v154_v54 }
  0xab   :  { %v1402_v58 = vsel %vm111_vm10, 1.0, %v1782_v61  ;;  %v1401_v59 = vsel %vm110_vm11, 1.0, %v1782_v61 }
  0xac   :  { %v155_v60 = vpack.c.bf16 %v1402_v58, %v1401_v59 }
  0xad   :  { %v85_v62 = vpop.permute.xlu1 %84  ;;  %v82_v63 = vpop.permute.xlu0 %81 }
  0xae   :  { %vm113_vm12 = vcmp.eq.s32.totalorder %v85_v62, %v1996_v56  ;;  %vm112_vm13 = vcmp.eq.s32.totalorder %v82_v63, %v1996_v56  ;;  %1583 = vmatmul.mubr.msk.bf16.gmra.mxu0 %vm160_vm6, %v155_v60 }
  0xaf   :  { %v1404_v15 = vsel %vm113_vm12, 1.0, %v1782_v61  ;;  %v1403_v0 = vsel %vm112_vm13, 1.0, %v1782_v61 }
  0xb0   :  { %v156_v1 = vpack.c.bf16 %v1404_v15, %v1403_v0 }
  0xb1   :  { %v91_v2 = vpop.permute.xlu1 %90  ;;  %v88_v3 = vpop.permute.xlu0 %87 }
  0xb2   :  { %vm115_vm14 = vcmp.eq.s32.totalorder %v91_v2, %v1996_v56  ;;  %vm114_vm15 = vcmp.eq.s32.totalorder %v88_v3, %v1996_v56  ;;  %1586 = vmatprep.mubr.msk.bf16.mxu0 %vm160_vm6, %v156_v1 }
  0xb3   :  { %v1406_v4 = vsel %vm115_vm14, 1.0, %v1782_v61  ;;  %v1405_v5 = vsel %vm114_vm15, 1.0, %v1782_v61 }
  0xb4   :  { %v157_v6 = vpack.c.bf16 %v1406_v4, %v1405_v5 }
  0xb5   :  { %v97_v7 = vpop.permute.xlu1 %96  ;;  %v94_v8 = vpop.permute.xlu0 %93 }
  0xb6   :  { %vm117_vm0 = vcmp.eq.s32.totalorder %v97_v7, %v1996_v56  ;;  %vm116_vm1 = vcmp.eq.s32.totalorder %v94_v8, %v1996_v56  ;;  %1587 = vmatmul.mubr.msk.bf16.gmra.mxu0 %vm160_vm6, %v157_v6  ;;  %v1762_v7 = vld [vmem:[%s2262_s4 + $0x28] sm:$0xff]  }
  0xb7   :  { %v1408_v9 = vsel %vm117_vm0, 1.0, %v1782_v61  ;;  %v1407_v10 = vsel %vm116_vm1, 1.0, %v1782_v61 }
  0xb8   :  { %v158_v11 = vpack.c.bf16 %v1408_v9, %v1407_v10 }
  0xb9   :  { %v103_v12 = vpop.permute.xlu1 %102  ;;  %v100_v13 = vpop.permute.xlu0 %99 }
  0xba   :  { %vm119_vm2 = vcmp.eq.s32.totalorder %v103_v12, %v1996_v56  ;;  %vm118_vm3 = vcmp.eq.s32.totalorder %v100_v13, %v1996_v56  ;;  %1590 = vmatprep.mubr.msk.bf16.mxu0 %vm160_vm6, %v158_v11  ;;  %v1763_v12 = vld [vmem:[%s2262_s4 + $0x20] sm:$0xff]  }
  0xbb   :  { %v1410_v14 = vsel %vm119_vm2, 1.0, %v1782_v61  ;;  %v1409_v16 = vsel %vm118_vm3, 1.0, %v1782_v61 }
  0xbc   :  { %v159_v17 = vpack.c.bf16 %v1410_v14, %v1409_v16  ;;  %v1764_v16 = vld [vmem:[%s2262_s4 + $0x18] sm:$0xff]  }
  0xbd   :  { %v889_v18 = vpop.permute.xlu1 %888  ;;  %v886_v19 = vpop.permute.xlu0 %885 }
  0xbe   :  { %vm933_vm4 = vcmp.eq.s32.totalorder %v889_v18, %v1996_v56  ;;  %vm932_vm5 = vcmp.eq.s32.totalorder %v886_v19, %v1996_v56  ;;  %1591 = vmatmul.mubr.msk.bf16.gmra.mxu0 %vm160_vm6, %v159_v17 }
  0xbf   :  { %v1460_v20 = vsel %vm933_vm4, 1.0, %v1782_v61  ;;  %v1459_v21 = vsel %vm932_vm5, 1.0, %v1782_v61 }
  0xc0   :  { %v980_v22 = vpack.c.bf16 %v1460_v20, %v1459_v21  ;;  %v1765_v21 = vld [vmem:[%s2262_s4 + $0x10] sm:$0xff]  }
  0xc1   :  { %v895_v23 = vpop.permute.xlu1 %894  ;;  %v892_v24 = vpop.permute.xlu0 %891 }
  0xc2   :  { %vm935_vm7 = vcmp.eq.s32.totalorder %v895_v23, %v1996_v56  ;;  %vm934_vm8 = vcmp.eq.s32.totalorder %v892_v24, %v1996_v56  ;;  %1678 = vmatprep.mubr.msk.bf16.mxu0 %vm160_vm6, %v980_v22  ;;  %v1766_v24 = vld [vmem:[%s2262_s4 + $0x8] sm:$0xff]  }
  0xc3   :  { %v1462_v25 = vsel %vm935_vm7, 1.0, %v1782_v61  ;;  %v1461_v26 = vsel %vm934_vm8, 1.0, %v1782_v61 }
  0xc4   :  { %v981_v27 = vpack.c.bf16 %v1462_v25, %v1461_v26 }
  0xc5   :  { %v901_v28 = vpop.permute.xlu1 %900  ;;  %v898_v29 = vpop.permute.xlu0 %897 }
  0xc6   :  { %vm937_vm9 = vcmp.eq.s32.totalorder %v901_v28, %v1996_v56  ;;  %vm936_vm10 = vcmp.eq.s32.totalorder %v898_v29, %v1996_v56  ;;  %1679 = vmatmul.mubr.msk.bf16.vlgmr.msra.gmra.mxu0 %vm160_vm6, %v981_v27  ;;  %v1767_v29 = vld [vmem:[%s2262_s4] sm:$0xff]  }
  0xc7   :  { %v1464_v30 = vsel %vm937_vm9, 1.0, %v1782_v61  ;;  %v1463_v31 = vsel %vm936_vm10, 1.0, %v1782_v61 }
  0xc8   :  { %v982_v33 = vpack.c.bf16 %v1464_v30, %v1463_v31 }
  0xc9   :  { %v907_v34 = vpop.permute.xlu1 %906  ;;  %v904_v35 = vpop.permute.xlu0 %903 }
  0xca   :  { %vm939_vm11 = vcmp.eq.s32.totalorder %v907_v34, %v1996_v56  ;;  %vm938_vm12 = vcmp.eq.s32.totalorder %v904_v35, %v1996_v56  ;;  %1682 = vmatprep.mubr.msk.bf16.mxu0 %vm160_vm6, %v982_v33 }
  0xcb   :  { %v1466_v36 = vsel %vm939_vm11, 1.0, %v1782_v61  ;;  %v1465_v37 = vsel %vm938_vm12, 1.0, %v1782_v61 }
  0xcc   :  { %v983_v39 = vpack.c.bf16 %v1466_v36, %v1465_v37  ;;  %v1769_v37 = vld [vmem:[%s2263_s6 + $0x30] sm:$0xff]  }
  0xcd   :  { %v913_v40 = vpop.permute.xlu1 %912  ;;  %v910_v41 = vpop.permute.xlu0 %909 }
  0xce   :  { %vm941_vm13 = vcmp.eq.s32.totalorder %v913_v40, %v1996_v56  ;;  %vm940_vm14 = vcmp.eq.s32.totalorder %v910_v41, %v1996_v56  ;;  %1683 = vmatmul.mubr.msk.bf16.gmra.mxu0 %vm160_vm6, %v983_v39  ;;  %v1770_v40 = vld [vmem:[%s2263_s6 + $0x28] sm:$0xff]  }
  0xcf   :  { %v1468_v42 = vsel %vm941_vm13, 1.0, %v1782_v61  ;;  %v1467_v43 = vsel %vm940_vm14, 1.0, %v1782_v61 }
  0xd0   :  { %v984_v44 = vpack.c.bf16 %v1468_v42, %v1467_v43 }
  0xd1   :  { %v919_v46 = vpop.permute.xlu1 %918  ;;  %v916_v47 = vpop.permute.xlu0 %915 }
  0xd2   :  { %vm943_vm15 = vcmp.eq.s32.totalorder %v919_v46, %v1996_v56  ;;  %vm942_vm0 = vcmp.eq.s32.totalorder %v916_v47, %v1996_v56  ;;  %1686 = vmatprep.mubr.msk.bf16.mxu0 %vm160_vm6, %v984_v44 }
  0xd3   :  { %v1470_v48 = vsel %vm943_vm15, 1.0, %v1782_v61  ;;  %v1469_v49 = vsel %vm942_vm0, 1.0, %v1782_v61 }
  0xd4   :  { %v985_v50 = vpack.c.bf16 %v1470_v48, %v1469_v49  ;;  %v1772_v48 = vld [vmem:[%s2263_s6 + $0x18] sm:$0xff]  }
  0xd5   :  { %v925_v51 = vpop.permute.xlu1 %924  ;;  %v922_v52 = vpop.permute.xlu0 %921 }
  0xd6   :  { %vm945_vm1 = vcmp.eq.s32.totalorder %v925_v51, %v1996_v56  ;;  %vm944_vm2 = vcmp.eq.s32.totalorder %v922_v52, %v1996_v56  ;;  %1687 = vmatmul.mubr.msk.bf16.gmra.mxu0 %vm160_vm6, %v985_v50 }
  0xd7   :  { %v1472_v53 = vsel %vm945_vm1, 1.0, %v1782_v61  ;;  %v1471_v54 = vsel %vm944_vm2, 1.0, %v1782_v61 }
  0xd8   :  { %v986_v55 = vpack.c.bf16 %v1472_v53, %v1471_v54  ;;  %v1773_v53 = vld [vmem:[%s2263_s6 + $0x10] sm:$0xff]  }
  0xd9   :  { %v931_v57 = vpop.permute.xlu1 %930  ;;  %v928_v58 = vpop.permute.xlu0 %927 }
  0xda   :  { %vm947_vm3 = vcmp.eq.s32.totalorder %v931_v57, %v1996_v56  ;;  %vm946_vm4 = vcmp.eq.s32.totalorder %v928_v58, %v1996_v56  ;;  %1690 = vmatprep.mubr.msk.bf16.mxu0 %vm160_vm6, %v986_v55  ;;  %v1761_v56 = vld [vmem:[%s2262_s4 + $0x30] sm:$0xff]   ;;  %v1774_v57 = vld [vmem:[%s2263_s6 + $0x8] sm:$0xff]  }
  0xdb   :  { %v1474_v59 = vsel %vm947_vm3, 1.0, %v1782_v61  ;;  %v1473_v60 = vsel %vm946_vm4, 1.0, %v1782_v61 }
  0xdc   :  { %v987_v62 = vpack.c.bf16 %v1474_v59, %v1473_v60 }
  0xde   :  { %1691 = vmatmul.mubr.msk.bf16.gmra.mxu0 %vm160_vm6, %v987_v62  ;;  %vm1783_vm6 = vmmov 0  }
  0xdf   :  { %1742 = vmatprep.mubr.msk.bf16.mxu0 %vm1783_vm6, %v1782_v61 }
 0x147   :  { %v1598_v63 = vpop.f32.mrf.mxu1 }
 0x149   :  { %v491_v15 = vpop.f32.mrf.mxu1 }
 0x14b   :  { %v1599_v0 = vpop.f32.mrf.mxu1 }
 0x14c   :  { %v571_v3 = vpack.c.bf16 %v1599_v0, %v1598_v63  ;;  %v1775_v63 = vld [vmem:[%s2263_s6] sm:$0xff]  }
 0x14d   :  { %v494_v1 = vpop.f32.mrf.mxu1 }
 0x14e   :  { %v570_v2 = vpack.c.bf16 %v494_v1, %v491_v15 }
 0x14f   :  { %v1602_v4 = vpop.f32.mrf.mxu1 }
 0x150   :  { %1628 = vmatprep.mubr.bf16.mxu1 %v570_v2 }
 0x151   :  { %v507_v5 = vpop.f32.mrf.mxu1  ;;  %1629 = vmatmul.mubr.bf16.vlgmr.msra.gmra.mxu1 %v571_v3 }
 0x152   :  { %1645 = vmatpush3.bf16.msra.mxu1 %v1760_v45  ;;  %v1771_v45 = vld [vmem:[%s2263_s6 + $0x20] sm:$0xff]  }
 0x153   :  { %v1603_v6 = vpop.f32.mrf.mxu1  ;;  %1646 = vmatprep.subr.bf16.mxu1 %v1761_v56 }
 0x154   :  { %v573_v10 = vpack.c.bf16 %v1603_v6, %v1602_v4 }
 0x155   :  { %v510_v8 = vpop.f32.mrf.mxu1 }
 0x156   :  { %v572_v9 = vpack.c.bf16 %v510_v8, %v507_v5  ;;  %1647 = vmatpush3.bf16.msra.mxu1 %v1761_v56 }
 0x157   :  { %v1606_v11 = vpop.f32.mrf.mxu1  ;;  %1648 = vmatprep.subr.bf16.mxu1 %v1762_v7 }
 0x158   :  { %1632 = vmatprep.mubr.bf16.mxu1 %v572_v9 }
 0x159   :  { %v523_v13 = vpop.f32.mrf.mxu1  ;;  %1633 = vmatmul.mubr.bf16.gmra.mxu1 %v573_v10 }
 0x15a   :  { %1649 = vmatpush3.bf16.msra.mxu1 %v1762_v7 }
 0x15b   :  { %v1607_v14 = vpop.f32.mrf.mxu1  ;;  %1650 = vmatprep.subr.bf16.mxu1 %v1763_v12 }
 0x15c   :  { %v575_v19 = vpack.c.bf16 %v1607_v14, %v1606_v11 }
 0x15d   :  { %v526_v17 = vpop.f32.mrf.mxu1 }
 0x15e   :  { %v574_v18 = vpack.c.bf16 %v526_v17, %v523_v13  ;;  %1651 = vmatpush3.bf16.msra.mxu1 %v1763_v12 }
 0x15f   :  { %v1610_v20 = vpop.f32.mrf.mxu1  ;;  %1652 = vmatprep.subr.bf16.mxu1 %v1764_v16 }
 0x160   :  { %1636 = vmatprep.mubr.bf16.mxu1 %v574_v18 }
 0x161   :  { %v539_v22 = vpop.f32.mrf.mxu1  ;;  %1637 = vmatmul.mubr.bf16.gmra.mxu1 %v575_v19 }
 0x162   :  { %1653 = vmatpush3.bf16.msra.mxu1 %v1764_v16 }
 0x163   :  { %v1611_v23 = vpop.f32.mrf.mxu1  ;;  %1654 = vmatprep.subr.bf16.mxu1 %v1765_v21 }
 0x164   :  { %v577_v28 = vpack.c.bf16 %v1611_v23, %v1610_v20 }
 0x165   :  { %v542_v25 = vpop.f32.mrf.mxu1 }
 0x166   :  { %v576_v26 = vpack.c.bf16 %v542_v25, %v539_v22  ;;  %1655 = vmatpush3.bf16.msra.mxu1 %v1765_v21  ;;  %v1580_v27 = vpop.f32.mrf.mxu0 }
 0x167   :  { %1656 = vmatprep.subr.bf16.mxu1 %v1766_v24 }
 0x168   :  { %v226_v30 = vpop.f32.mrf.mxu0  ;;  %1640 = vmatprep.mubr.bf16.mxu1 %v576_v26 }
 0x169   :  { %1641 = vmatmul.mubr.bf16.gmra.mxu1 %v577_v28 }
 0x16a   :  { %1657 = vmatpush3.bf16.msra.mxu1 %v1766_v24  ;;  %v1581_v31 = vpop.f32.mrf.mxu0 }
 0x16b   :  { %1658 = vmatprep.subr.bf16.mxu1 %v1767_v29  ;;  %v306_v36 = vpack.c.bf16 %v1581_v31, %v1580_v27 }
 0x16c   :  { %v229_v33 = vpop.f32.mrf.mxu0 }
 0x16d   :  { %v305_v34 = vpack.c.bf16 %v229_v33, %v226_v30 }
 0x16e   :  { %1659 = vmatpush3.bf16.msra.mxu1 %v1767_v29  ;;  %v1584_v35 = vpop.f32.mrf.mxu0 }
 0x16f   :  { %1660 = vmatprep.mubr.bf16.mxu1 %v305_v34  ;;  %1694 = vmatprep.subr.bf16.mxu1 %v1768_v32 }
 0x170   :  { %v242_v38 = vpop.f32.mrf.mxu0 }
 0x171   :  { %1661 = vmatmul.mubr.bf16.vlgmr.msra.gmra.mxu1 %v306_v36 }
 0x172   :  { %1695 = vmatpush3.bf16.msra.mxu1 %v1768_v32  ;;  %v1585_v39 = vpop.f32.mrf.mxu0 }
 0x173   :  { %1696 = vmatprep.subr.bf16.mxu1 %v1769_v37  ;;  %v308_v44 = vpack.c.bf16 %v1585_v39, %v1584_v35 }
 0x174   :  { %v245_v41 = vpop.f32.mrf.mxu0 }
 0x175   :  { %v307_v42 = vpack.c.bf16 %v245_v41, %v242_v38 }
 0x176   :  { %1697 = vmatpush3.bf16.msra.mxu1 %v1769_v37  ;;  %v1588_v43 = vpop.f32.mrf.mxu0 }
 0x177   :  { %1664 = vmatprep.mubr.bf16.mxu1 %v307_v42  ;;  %1698 = vmatprep.subr.bf16.mxu1 %v1770_v40 }
 0x178   :  { %v258_v46 = vpop.f32.mrf.mxu0 }
 0x179   :  { %1665 = vmatmul.mubr.bf16.gmra.mxu1 %v308_v44 }
 0x17a   :  { %1699 = vmatpush3.bf16.msra.mxu1 %v1770_v40  ;;  %v1589_v47 = vpop.f32.mrf.mxu0 }
 0x17b   :  { %1700 = vmatprep.subr.bf16.mxu1 %v1771_v45  ;;  %v310_v52 = vpack.c.bf16 %v1589_v47, %v1588_v43 }
 0x17c   :  { %v261_v49 = vpop.f32.mrf.mxu0 }
 0x17d   :  { %v309_v50 = vpack.c.bf16 %v261_v49, %v258_v46 }
 0x17e   :  { %1701 = vmatpush3.bf16.msra.mxu1 %v1771_v45  ;;  %v1592_v51 = vpop.f32.mrf.mxu0 }
 0x17f   :  { %1668 = vmatprep.mubr.bf16.mxu1 %v309_v50  ;;  %1702 = vmatprep.subr.bf16.mxu1 %v1772_v48 }
 0x180   :  { %v274_v54 = vpop.f32.mrf.mxu0 }
 0x181   :  { %1669 = vmatmul.mubr.bf16.gmra.mxu1 %v310_v52 }
 0x182   :  { %1703 = vmatpush3.bf16.msra.mxu1 %v1772_v48  ;;  %v1593_v55 = vpop.f32.mrf.mxu0 }
 0x183   :  { %1704 = vmatprep.subr.bf16.mxu1 %v1773_v53  ;;  %v312_v62 = vpack.c.bf16 %v1593_v55, %v1592_v51 }
 0x184   :  { %v277_v58 = vpop.f32.mrf.mxu0 }
 0x185   :  { %v311_v59 = vpack.c.bf16 %v277_v58, %v274_v54 }
 0x186   :  { %1705 = vmatpush3.bf16.msra.mxu1 %v1773_v53  ;;  %v1680_v60 = vpop.f32.mrf.mxu0 }
 0x187   :  { %1672 = vmatprep.mubr.bf16.mxu1 %v311_v59  ;;  %1706 = vmatprep.subr.bf16.mxu1 %v1774_v57 }
 0x188   :  { %v1046_v15 = vpop.f32.mrf.mxu0 }
 0x189   :  { %1673 = vmatmul.mubr.bf16.gmra.mxu1 %v312_v62 }
 0x18a   :  { %1707 = vmatpush3.bf16.msra.mxu1 %v1774_v57  ;;  %v1681_v0 = vpop.f32.mrf.mxu0 }
 0x18b   :  { %1708 = vmatprep.subr.bf16.mxu1 %v1775_v63  ;;  %v1126_v4 = vpack.c.bf16 %v1681_v0, %v1680_v60 }
 0x18c   :  { %v1049_v1 = vpop.f32.mrf.mxu0 }
 0x18d   :  { %v1125_v2 = vpack.c.bf16 %v1049_v1, %v1046_v15 }
 0x18e   :  { %1709 = vmatpush3.bf16.msra.mxu1 %v1775_v63  ;;  %v1684_v3 = vpop.f32.mrf.mxu0 }
 0x18f   :  { %1710 = vmatprep.mubr.bf16.mxu1 %v1125_v2  ;;  %v2209_v2 = vld [vmem:[%s2264_s7] ss:$0 sm:$0xff] }
 0x190   :  { %v1062_v56 = vpop.f32.mrf.mxu0 }
 0x191   :  { %1711 = vmatmul.mubr.bf16.vlgmr.msra.gmra.mxu1 %v1126_v4 }
 0x192   :  { %v1685_v5 = vpop.f32.mrf.mxu0 }
 0x193   :  { %v1128_v9 = vpack.c.bf16 %v1685_v5, %v1684_v3 }
 0x194   :  { %v1065_v6 = vpop.f32.mrf.mxu0 }
 0x195   :  { %v1127_v7 = vpack.c.bf16 %v1065_v6, %v1062_v56 }
 0x196   :  { %v1688_v8 = vpop.f32.mrf.mxu0 }
 0x197   :  { %1714 = vmatprep.mubr.bf16.mxu1 %v1127_v7 }
 0x198   :  { %v1078_v10 = vpop.f32.mrf.mxu0 }
 0x199   :  { %1715 = vmatmul.mubr.bf16.gmra.mxu1 %v1128_v9 }
 0x19a   :  { %v1689_v11 = vpop.f32.mrf.mxu0 }
 0x19b   :  { %v1130_v16 = vpack.c.bf16 %v1689_v11, %v1688_v8 }
 0x19c   :  { %v1081_v12 = vpop.f32.mrf.mxu0 }
 0x19d   :  { %v1129_v13 = vpack.c.bf16 %v1081_v12, %v1078_v10 }
 0x19e   :  { %v1692_v14 = vpop.f32.mrf.mxu0 }
 0x19f   :  { %1718 = vmatprep.mubr.bf16.mxu1 %v1129_v13 }
 0x1a0   :  { %v1094_v17 = vpop.f32.mrf.mxu0 }
 0x1a1   :  { %1719 = vmatmul.mubr.bf16.gmra.mxu1 %v1130_v16 }
 0x1a2   :  { %v1693_v18 = vpop.f32.mrf.mxu0 }
 0x1a3   :  { %v1132_v21 = vpack.c.bf16 %v1693_v18, %v1692_v14 }
 0x1a4   :  { %v1097_v19 = vpop.f32.mrf.mxu0 }
 0x1a5   :  { %v1131_v20 = vpack.c.bf16 %v1097_v19, %v1094_v17 }
 0x1a7   :  { %1722 = vmatprep.mubr.bf16.mxu1 %v1131_v20 }
 0x1a9   :  { %1723 = vmatmul.mubr.bf16.gmra.mxu1 %v1132_v21 }
 0x211   :  { %v1630_v22 = vpop.f32.mrf.mxu1 }
 0x213   :  { %v660_v23 = vpop.f32.mrf.mxu1 }
 0x215   :  { %v1631_v24 = vpop.f32.mrf.mxu1 }
 0x217   :  { %v663_v25 = vpop.f32.mrf.mxu1 }
 0x219   :  { %v1634_v26 = vpop.f32.mrf.mxu1 }
 0x21b   :  { %v676_v27 = vpop.f32.mrf.mxu1 }
 0x21d   :  { %v1635_v28 = vpop.f32.mrf.mxu1 }
 0x21f   :  { %v679_v29 = vpop.f32.mrf.mxu1 }
 0x221   :  { %v2189_v30 = vpop.f32.mrf.mxu1 }
 0x223   :  { %v692_v31 = vpop.f32.mrf.mxu1 }
 0x225   :  { %v2191_v32 = vpop.f32.mrf.mxu1 }
 0x227   :  { %v2193_v33 = vpop.f32.mrf.mxu1 }
 0x229   :  { %v2195_v34 = vpop.f32.mrf.mxu1 }
 0x22b   :  { %v2197_v35 = vpop.f32.mrf.mxu1 }
 0x22d   :  { %v2199_v36 = vpop.f32.mrf.mxu1 }
 0x22f   :  { %v2201_v37 = vpop.f32.mrf.mxu1 }
 0x231   :  { %v1662_v38 = vpop.f32.mrf.mxu1 }
 0x232   :  { %v814_v39 = vadd.f32 %v1662_v38, %v1630_v22 }
 0x233   :  { %v805_v40 = vpop.f32.mrf.mxu1 }
 0x234   :  { %v806_v41 = vadd.f32 %v805_v40, %v660_v23 }
 0x235   :  { %v1663_v42 = vpop.f32.mrf.mxu1 }
 0x236   :  { %v817_v43 = vadd.f32 %v1663_v42, %v1631_v24 }
 0x237   :  { %v808_v44 = vpop.f32.mrf.mxu1 }
 0x238   :  { %v809_v45 = vadd.f32 %v808_v44, %v663_v25 }
 0x239   :  { %v1666_v46 = vpop.f32.mrf.mxu1 }
 0x23a   :  { %v830_v47 = vadd.f32 %v1666_v46, %v1634_v26 }
 0x23b   :  { %v821_v48 = vpop.f32.mrf.mxu1 }
 0x23c   :  { %v822_v49 = vadd.f32 %v821_v48, %v676_v27 }
 0x23d   :  { %v1667_v50 = vpop.f32.mrf.mxu1 }
 0x23e   :  { %v833_v51 = vadd.f32 %v1667_v50, %v1635_v28 }
 0x23f   :  { %v824_v52 = vpop.f32.mrf.mxu1 }
 0x240   :  { %v825_v53 = vadd.f32 %v824_v52, %v679_v29 }
 0x241   :  { %v1670_v54 = vpop.f32.mrf.mxu1 }
 0x242   :  { %v846_v27 = vadd.f32 %v1670_v54, %v2189_v30 }
 0x243   :  { %v837_v55 = vpop.f32.mrf.mxu1 }
 0x244   :  { %v838_v57 = vadd.f32 %v837_v55, %v692_v31 }
 0x245   :  { %v1671_v58 = vpop.f32.mrf.mxu1 }
 0x247   :  { %v840_v59 = vpop.f32.mrf.mxu1 }
 0x248   :  { %v841_v30 = vadd.f32 %v840_v59, %v2193_v33 }
 0x249   :  { %v1674_v60 = vpop.f32.mrf.mxu1 }
 0x24a   :  { %v862_v54 = vadd.f32 %v1674_v60, %v2195_v34 }
 0x24b   :  { %v853_v62 = vpop.f32.mrf.mxu1 }
 0x24d   :  { %v1675_v63 = vpop.f32.mrf.mxu1 }
 0x24e   :  { %v865_v59 = vadd.f32 %v1675_v63, %v2199_v36 }
 0x24f   :  { %v2204_v15 = vpop.f32.mrf.mxu1 }
 0x251   :  { %v1712_v0 = vpop.f32.mrf.mxu1 }
 0x252   :  { %v1280_v1 = vadd.f32 %v1712_v0, %v814_v39 }
 0x253   :  { %v1215_v3 = vpop.f32.mrf.mxu1 }
 0x254   :  { %v1278_v4 = vadd.f32 %v1215_v3, %v806_v41  ;;  %v1303_v5 = vadd.f32 %v2209_v2, %v1280_v1 }
 0x255   :  { %v1713_v56 = vpop.f32.mrf.mxu1 }
 0x256   :  { %v1281_v6 = vadd.f32 %v1713_v56, %v817_v43  ;;  %v1301_v8 = vadd.f32 %v2209_v2, %v1278_v4  ;;  %v1319_v12 = vmax.f32 %v1303_v5, 0.0  ;;  %v849_v43 = vadd.f32 %v1671_v58, %v2191_v32 }
 0x257   :  { %v1218_v7 = vpop.f32.mrf.mxu1  ;;  %v854_v58 = vadd.f32 %v853_v62, %v2197_v35 }
 0x258   :  { %v1304_v9 = vadd.f32 %v2209_v2, %v1281_v6  ;;  %v1279_v10 = vadd.f32 %v1218_v7, %v809_v45  ;;  %v1317_v18 = vmax.f32 %v1301_v8, 0.0  ;;  %v857_v8 = vadd.f32 %v2204_v15, %v2201_v37  ;;  %v1333_v37 = vld [vmem:[%s2265_s8] sm:$0x1] }
 0x259   :  { %v1716_v11 = vpop.f32.mrf.mxu1  ;;  %v1343_v15 = vstv %s2266_s9 }
 0x25a   :  { %v1320_v13 = vmax.f32 %v1304_v9, 0.0  ;;  %v1302_v14 = vadd.f32 %v2209_v2, %v1279_v10  ;;  %v1284_v16 = vadd.f32 %v1716_v11, %v830_v47 }
 0x25b   :  { %v1231_v17 = vpop.f32.mrf.mxu1 }
 0x25c   :  { %v2215_v19 = vpack.c.bf16 %v1320_v13, %v1319_v12  ;;  %v1318_v20 = vmax.f32 %v1302_v14, 0.0  ;;  %v1282_v21 = vadd.f32 %v1231_v17, %v822_v49  ;;  %v1307_v24 = vadd.f32 %v2209_v2, %v1284_v16 }
 0x25d   :  { %v1717_v22 = vpop.f32.mrf.mxu1 }
 0x25e   :  { %v2217_v23 = vpack.c.bf16 %v1318_v20, %v1317_v18  ;;  %v1285_v25 = vadd.f32 %v1717_v22, %v833_v51  ;;  %v1305_v28 = vadd.f32 %v2209_v2, %v1282_v21  ;;  %v1323_v39 = vmax.f32 %v1307_v24, 0.0 }
 0x25f   :  { %v1234_v26 = vpop.f32.mrf.mxu1 }
 0x260   :  { %v1308_v29 = vadd.f32 %v2209_v2, %v1285_v25  ;;  %v1283_v31 = vadd.f32 %v1234_v26, %v825_v53  ;;  %v1321_v45 = vmax.f32 %v1305_v28, 0.0 }
 0x261   :  { %v1720_v38 = vpop.f32.mrf.mxu1 }
 0x262   :  { %v1324_v40 = vmax.f32 %v1308_v29, 0.0  ;;  %v1306_v41 = vadd.f32 %v2209_v2, %v1283_v31  ;;  %v1288_v42 = vadd.f32 %v1720_v38, %v846_v27 }
 0x263   :  { %v1247_v44 = vpop.f32.mrf.mxu1 }
 0x264   :  { %v1337_v46 = vpack.c.bf16 %v1324_v40, %v1323_v39  ;;  %v1322_v47 = vmax.f32 %v1306_v41, 0.0  ;;  %v1286_v48 = vadd.f32 %v1247_v44, %v838_v57  ;;  %v1311_v51 = vadd.f32 %v2209_v2, %v1288_v42 }
 0x265   :  { %v1721_v49 = vpop.f32.mrf.mxu1 }
 0x266   :  { %v1336_v50 = vpack.c.bf16 %v1322_v47, %v1321_v45  ;;  %v1289_v52 = vadd.f32 %v1721_v49, %v849_v43  ;;  %v1309_v55 = vadd.f32 %v2209_v2, %v1286_v48  ;;  %v1327_v3 = vmax.f32 %v1311_v51, 0.0 }
 0x267   :  { %v1250_v53 = vpop.f32.mrf.mxu1 }
 0x268   :  { %v1312_v0 = vadd.f32 %v2209_v2, %v1289_v52  ;;  %v1287_v32 = vadd.f32 %v1250_v53, %v841_v30  ;;  %v1325_v5 = vmax.f32 %v1309_v55, 0.0 }
 0x269   :  { %v1724_v1 = vpop.f32.mrf.mxu1 }
 0x26a   :  { %v1328_v57 = vmax.f32 %v1312_v0, 0.0  ;;  %v1310_v4 = vadd.f32 %v2209_v2, %v1287_v32  ;;  %v1292_v33 = vadd.f32 %v1724_v1, %v862_v54 }
 0x26b   :  { %v1263_v56 = vpop.f32.mrf.mxu1 }
 0x26c   :  { %v1339_v6 = vpack.c.bf16 %v1328_v57, %v1327_v3  ;;  %v1326_v7 = vmax.f32 %v1310_v4, 0.0  ;;  %v1290_v34 = vadd.f32 %v1263_v56, %v854_v58  ;;  %v1315_v35 = vadd.f32 %v2209_v2, %v1292_v33 }
 0x26d   :  { %v1725_v60 = vpop.f32.mrf.mxu1 }
 0x26e   :  { %v1338_v9 = vpack.c.bf16 %v1326_v7, %v1325_v5  ;;  %v1293_v62 = vadd.f32 %v1725_v60, %v865_v59  ;;  %v1313_v11 = vadd.f32 %v2209_v2, %v1290_v34  ;;  %v1331_v36 = vmax.f32 %v1315_v35, 0.0 }
 0x26f   :  { %v1266_v10 = vpop.f32.mrf.mxu1 }
 0x270   :  { %v1316_v12 = vadd.f32 %v2209_v2, %v1293_v62  ;;  %v1291_v13 = vadd.f32 %v1266_v10, %v857_v8  ;;  %v1329_v16 = vmax.f32 %v1313_v11, 0.0 }
 0x272   :  { %v1332_v63 = vmax.f32 %v1316_v12, 0.0  ;;  %v1314_v14 = vadd.f32 %v2209_v2, %v1291_v13 }
 0x274   :  { %v1341_v17 = vpack.c.bf16 %v1332_v63, %v1331_v36  ;;  %v1330_v18 = vmax.f32 %v1314_v14, 0.0 }
 0x276   :  { %v1340_v20 = vpack.c.bf16 %v1330_v18, %v1329_v16  ;;  %1727 = vmatpush3.bf16.xpose.msra.mxu0 %v1341_v17 }
 0x277   :  { %1728 = vmatprep.subr.bf16.mxu0 %v1782_v61 }
 0x27e   :  { %1729 = vmatpush3.bf16.xpose.msra.mxu0 %v1340_v20 }
 0x27f   :  { %1730 = vmatprep.subr.bf16.mxu0 %v1782_v61 }
 0x286   :  { %1731 = vmatpush3.bf16.xpose.msra.mxu0 %v1339_v6 }
 0x287   :  { %1732 = vmatprep.subr.bf16.mxu0 %v1782_v61 }
 0x28e   :  { %1733 = vmatpush3.bf16.xpose.msra.mxu0 %v1338_v9 }
 0x28f   :  { %1734 = vmatprep.subr.bf16.mxu0 %v1782_v61 }
 0x296   :  { %1735 = vmatpush3.bf16.xpose.msra.mxu0 %v1337_v46 }
 0x297   :  { %1736 = vmatprep.subr.bf16.mxu0 %v1782_v61 }
 0x29e   :  { %1737 = vmatpush3.bf16.xpose.msra.mxu0 %v1336_v50 }
 0x29f   :  { %1738 = vmatprep.subr.bf16.mxu0 %v1782_v61 }
 0x2a6   :  { %1739 = vmatpush3.bf16.xpose.msra.mxu0 %v2215_v19 }
 0x2a7   :  { %1740 = vmatprep.subr.bf16.mxu0 %v1782_v61 }
 0x2ae   :  { %1741 = vmatpush3.bf16.xpose.msra.mxu0 %v2217_v23 }
 0x2b5   :  { %1743 = vmatmul.mubr.bf16.vlgmr.msra.gmra.mxu0 %v1333_v37 }
 0x375   :  { %v1378_v2 = vpop.f32.mrf.mxu0 }
 0x376   :  { %v1379_v21 = vadd.f32 %v1378_v2, %v1343_v15 }
 0x377   :  { %v1744_v22 = vpop.f32.mrf.mxu0 }
 0x378   :  { %v1384_v24 = vsub.f32 0.0, %v1379_v21 }
 0x379   :  { %v1381_v25 = vpop.f32.mrf.mxu0 }
 0x37a   :  { %v1385_v26 = vmul.f32 1.442695, %v1384_v24 }
 0x37b   :  { %v1745_v19 = vpop.f32.mrf.mxu0 }
 0x37c   :  { %1776 = vpow2.f32 %v1385_v26 }
 0x389   :  { %v1777_v61 = vpop.eup %1776 }
 0x38a   :  { %v1387_v27 = vadd.f32 1.0, %v1777_v61 }
 0x38c   :  { %1778 = vrcp.f32 %v1387_v27 }
 0x399   :  { %v1779_v23 = vpop.eup %1778 }
 0x39a   :  { %1390 = vst [vmem:[%s2267_s10] sm:$0x1] %v1779_v23 }

</bundles_post_ra>
